<compile_context>
chip_gen: v7x
topology: tpu7x:2x2x1
jax: 0.10.0
libtpu: 0.0.40
codegen_flags: <defaults>
</compile_context>

<pallas_src>
import jax
import jax.numpy as jnp
from jax import lax
from jax.experimental import pallas as pl
from jax.experimental.pallas import tpu as pltpu

_EPS = 1e-12                       # F.normalize default eps
_VMEM_LIMIT_BYTES = 32 * 1024 * 1024   # explicit scoped-VMEM limit (portable)
_VMEM_BUDGET_BYTES = 24 * 1024 * 1024  # block budget (leaves headroom)


def _round_up(x, m):
    return ((x + m - 1) // m) * m


def _sublane_multiple(dtype):
    # f32 -> 8, bf16/f16 -> 16, int8/fp8 -> 32 (packed-sublane layouts)
    return max(8, 32 // jnp.dtype(dtype).itemsize)


def _pick_tile_m(T, D, dtype, *, target=2048):
    """Pick a token-tile size: as big as the VMEM budget allows, dtype-aware."""
    sub = _sublane_multiple(dtype)
    row_bytes = D * jnp.dtype(dtype).itemsize
    # input + output blocks, each double-buffered => ~4 live copies per step
    budget_rows = max(sub, _VMEM_BUDGET_BYTES // (4 * row_bytes))
    tm = min(target, budget_rows, _round_up(T, sub))
    # Prefer >= 2 grid steps so dimension_semantics=("parallel",) can shard
    # the token axis across TensorCores (matters most on v7x, 2 TC/chip).
    if T > sub:
        tm = min(tm, _round_up(-(-T // 2), sub))
    tm = max(sub, (tm // sub) * sub)
    return tm


# ----------------------------------------------------------------------------
# Kernel A: normalize along the LAST axis of a (tile_m, D) slab; gamma comes in
# either as (1, D) (per-feature) or (tile_m, 1) (per-row) and broadcasts.
# ----------------------------------------------------------------------------
def _l2norm_lastdim_kernel(x_ref, g_ref, o_ref):
    x = x_ref[...]
    xf = x.astype(jnp.float32)
    ss = jnp.sum(xf * xf, axis=-1, keepdims=True)            # (tm, 1), f32
    # rsqrt(max(ss, eps^2)) == 1 / max(sqrt(ss), eps)  -> EUP, frees VALU slots
    inv = lax.rsqrt(jnp.maximum(ss, _EPS * _EPS))
    if x.dtype == jnp.float32:
        o_ref[...] = (xf * inv * g_ref[...].astype(jnp.float32)).astype(o_ref.dtype)
    else:
        # sub-f32 (e.g. bf16): reduce stayed in f32 above; do the scale in the
        # native dtype to avoid materializing a full f32 copy of the tile.
        o_ref[...] = ((x * inv.astype(x.dtype))
                      * g_ref[...].astype(x.dtype)).astype(o_ref.dtype)


def _normalize_lastdim_scale(x2d, gamma, *, gamma_per_row):
    """out[r, :] = x2d[r, :] / max(||x2d[r, :]||, eps) * gamma."""
    T, D = x2d.shape
    tm = _pick_tile_m(T, D, x2d.dtype)
    grid = (pl.cdiv(T, tm),)       # boundary block masked by Pallas; no pad/slice

    if gamma_per_row:
        g = gamma.reshape(T, 1)
        g_spec = pl.BlockSpec((tm, 1), lambda i: (i, 0))
    else:
        g = gamma.reshape(1, D)
        g_spec = pl.BlockSpec((1, D), lambda i: (0, 0))      # tiny, resident

    return pl.pallas_call(
        _l2norm_lastdim_kernel,
        out_shape=jax.ShapeDtypeStruct((T, D), x2d.dtype),
        grid_spec=pltpu.PrefetchScalarGridSpec(
            num_scalar_prefetch=0,
            grid=grid,
            in_specs=[
                pl.BlockSpec((tm, D), lambda i: (i, 0)),     # lane-dense token tile
                g_spec,
            ],
            out_specs=pl.BlockSpec((tm, D), lambda i: (i, 0)),
        ),
        compiler_params=pltpu.CompilerParams(
            dimension_semantics=("parallel",),
            vmem_limit_bytes=_VMEM_LIMIT_BYTES,
        ),
    )(x2d, g)


# ----------------------------------------------------------------------------
# Kernel B: 2-D, normalize along AXIS 0 (columns); gamma is a (D, 1) column.
# Sublane (XLU) reduce, no wrapper-side transposes.
# ----------------------------------------------------------------------------
def _l2norm_axis0_kernel(x_ref, g_ref, o_ref):
    x = x_ref[...]
    xf = x.astype(jnp.float32)
    ss = jnp.sum(xf * xf, axis=0, keepdims=True)             # (1, tn), f32
    inv = lax.rsqrt(jnp.maximum(ss, _EPS * _EPS))
    g = g_ref[...].astype(jnp.float32)                        # (D, 1)
    o_ref[...] = (xf * inv * g).astype(o_ref.dtype)


def _normalize_axis0_scale(x2d, gamma):
    """out[:, c] = x2d[:, c] / max(||x2d[:, c]||, eps) * gamma[:, None]."""
    D, M = x2d.shape
    itemsize = jnp.dtype(x2d.dtype).itemsize
    # Whole norm axis (D) stays resident in one block for the sublane reduce.
    # TODO(synk): very large D would need a two-pass / accumulating variant.
    if 4 * D * M * itemsize <= _VMEM_BUDGET_BYTES:
        tn = M                                    # full last dim (always legal)
    else:
        max_cols = _VMEM_BUDGET_BYTES // (4 * D * itemsize)
        tn = max(128, (max_cols // 128) * 128)    # lane-dense multiple of 128
    grid = (pl.cdiv(M, tn),)
    g = gamma.reshape(D, 1)

    return pl.pallas_call(
        _l2norm_axis0_kernel,
        out_shape=jax.ShapeDtypeStruct((D, M), x2d.dtype),
        grid_spec=pltpu.PrefetchScalarGridSpec(
            num_scalar_prefetch=0,
            grid=grid,
            in_specs=[
                pl.BlockSpec((D, tn), lambda j: (0, j)),
                pl.BlockSpec((D, 1), lambda j: (0, 0)),
            ],
            out_specs=pl.BlockSpec((D, tn), lambda j: (0, j)),
        ),
        compiler_params=pltpu.CompilerParams(
            dimension_semantics=("parallel",),
            vmem_limit_bytes=_VMEM_LIMIT_BYTES,
        ),
    )(x2d, g)


# ----------------------------------------------------------------------------
# Module-faithful wrapper: mirrors RMSNorm.forward(x, dim)
# ----------------------------------------------------------------------------
def rmsnorm(x, gamma, dim):
    if x.ndim == 2:
        d = dim % 2
        if d == 0:
            # normalize columns (axis 0), gamma per row -> in-kernel sublane reduce
            return _normalize_axis0_scale(x, gamma)
        # normalize rows (axis 1), gamma per row
        return _normalize_lastdim_scale(x, gamma, gamma_per_row=True)
    elif x.ndim >= 3:
        d = dim % x.ndim
        if d == x.ndim - 1:
            D = x.shape[-1]
            y = _normalize_lastdim_scale(x.reshape(-1, D), gamma,
                                         gamma_per_row=False)
            return y.reshape(x.shape)
        # TODO(synk): >=3-D with dim != -1 (norm axis != gamma axis) not kernelized.
        raise NotImplementedError("RMSNorm >=3-D with dim != -1 not implemented")
    else:
        raise NotImplementedError("RMSNorm only supports 2-D and >=3-D inputs")


# ----------------------------------------------------------------------------
# Pure-JAX reference (mirrors the PyTorch forward exactly)
# ----------------------------------------------------------------------------
def ref_rmsnorm(x, gamma, dim):
    norm = jnp.sqrt(jnp.sum(x * x, axis=dim, keepdims=True))
    y = x / jnp.maximum(norm, _EPS)
    if x.ndim == 2:
        return y * gamma[:, None]
    return y * gamma.reshape((1,) * (x.ndim - 1) + (-1,))


if __name__ == "__main__":
    key = jax.random.PRNGKey(0)
    kx, kg, k2 = jax.random.split(key, 3)

    # 3-D (batch, seq, hidden) path, dim=-1. T = 1000 is deliberately not a
    # multiple of the tile so the masked boundary block is exercised.
    B, N, D = 2, 500, 256
    x = jax.random.normal(kx, (B, N, D), jnp.float32)
    gamma = 1.0 + 0.1 * jax.random.normal(kg, (D,), jnp.float32)

    out = jax.block_until_ready(rmsnorm(x, gamma, dim=-1))
    ref = ref_rmsnorm(x, gamma, -1)
    assert out.shape == (B, N, D)
    assert jnp.allclose(out, ref, atol=1e-5, rtol=1e-5), "3-D dim=-1 mismatch"

    # 2-D path, dim=0 (normalize columns, gamma per row) — in-kernel axis-0
    # reduce, no wrapper transposes; M=40 is small/unaligned on purpose.
    M = 40
    x2 = jax.random.normal(k2, (D, M), jnp.float32)
    out2 = jax.block_until_ready(rmsnorm(x2, gamma, dim=0))
    ref2 = ref_rmsnorm(x2, gamma, 0)
    assert out2.shape == (D, M)
    assert jnp.allclose(out2, ref2, atol=1e-5, rtol=1e-5), "2-D dim=0 mismatch"

    # 2-D path, dim=1 (normalize rows, gamma per row).
    out3 = jax.block_until_ready(rmsnorm(x2, gamma, dim=1))
    ref3 = ref_rmsnorm(x2, gamma, 1)
    assert out3.shape == (D, M)
    assert jnp.allclose(out3, ref3, atol=1e-5, rtol=1e-5), "2-D dim=1 mismatch"

    print("KERNEL_OK")
</pallas_src>

<mosaic_0001>
module attributes {stable_mosaic.version = 11 : i64} {
  func.func @_l2norm_lastdim_kernel(%arg0: i32, %arg1: memref<504x256xf32, #tpu.memory_space<vmem>>, %arg2: memref<1x256xf32, #tpu.memory_space<vmem>>, %arg3: memref<504x256xf32, #tpu.memory_space<vmem>>) attributes {dimension_semantics = [#tpu.dimension_semantics<parallel>], iteration_bounds = array<i64: 2>, scalar_prefetch = 0 : i64, scratch_operands = 0 : i64, tpu.core_type = #tpu.core_type<tc>, window_params = [{transform_indices = @transform_0, window_bounds = array<i64: 504, 256>}, {pipeline_mode = #tpu.pipeline_mode<synchronous>, transform_indices = @transform_1, window_bounds = array<i64: 1, 256>}, {transform_indices = @transform_2, window_bounds = array<i64: 504, 256>}]} {
    %c0 = arith.constant 0 : index
    %c0_0 = arith.constant 0 : index
    %0 = vector.load %arg1[%c0, %c0_0] : memref<504x256xf32, #tpu.memory_space<vmem>>, vector<504x256xf32>
    %1 = arith.mulf %0, %0 : vector<504x256xf32>
    %cst = arith.constant dense<0.000000e+00> : vector<504xf32>
    %2 = vector.multi_reduction <add>, %1, %cst [1] : vector<504x256xf32> to vector<504xf32>
    %3 = vector.shape_cast %2 : vector<504xf32> to vector<504x1xf32>
    %cst_1 = arith.constant 1.000000e-24 : f32
    %4 = vector.broadcast %cst_1 : f32 to vector<504x1xf32>
    %5 = arith.maximumf %3, %4 : vector<504x1xf32>
    %6 = math.rsqrt %5 : vector<504x1xf32>
    %7 = vector.broadcast %6 : vector<504x1xf32> to vector<504x256xf32>
    %8 = arith.mulf %0, %7 : vector<504x256xf32>
    %c0_2 = arith.constant 0 : index
    %c0_3 = arith.constant 0 : index
    %9 = vector.load %arg2[%c0_2, %c0_3] : memref<1x256xf32, #tpu.memory_space<vmem>>, vector<1x256xf32>
    %10 = vector.broadcast %9 : vector<1x256xf32> to vector<504x256xf32>
    %11 = arith.mulf %8, %10 : vector<504x256xf32>
    %c0_4 = arith.constant 0 : index
    %c0_5 = arith.constant 0 : index
    %12 = vector.load %arg3[%c0_4, %c0_5] : memref<504x256xf32, #tpu.memory_space<vmem>>, vector<504x256xf32>
    tpu.vector_store %arg3[%c0_4, %c0_5], %11 {strides = array<i32>} : memref<504x256xf32, #tpu.memory_space<vmem>>, vector<504x256xf32>,
    return
  }
  func.func @transform_0(%arg0: i32) -> (i32, i32) {
    %c0_i32 = arith.constant 0 : i32
    %c0_i32_0 = arith.constant 0 : i32
    return %arg0, %c0_i32 : i32, i32
  }
  func.func @transform_1(%arg0: i32) -> (i32, i32) {
    %c0_i32 = arith.constant 0 : i32
    %c0_i32_0 = arith.constant 0 : i32
    %c0_i32_1 = arith.constant 0 : i32
    return %c0_i32, %c0_i32_0 : i32, i32
  }
  func.func @transform_2(%arg0: i32) -> (i32, i32) {
    %c0_i32 = arith.constant 0 : i32
    %c0_i32_0 = arith.constant 0 : i32
    return %arg0, %c0_i32 : i32, i32
  }
}

</mosaic_0001>

<bundles_post_ra>
// kernel: tpu_custom_call.1
= control target key start
LH: loop header
LB: loop body
LE: loop exit
PB: predicated region body
PF: predicated region fallthrough
CT: control target
= control target key end

     0   :  { %7 = vsyncpa [#allocation3], 0  ;;  %s2516_s0 = inlined_call_operand.hbm [shape: f32[1000,256], index: 0, kind: input, shape index: {}]   ;;  %s2517_s1 = inlined_call_operand.vmem [shape: f32[1,256], index: 1, kind: input, shape index: {}]   ;;  %s2518_s2 = inlined_call_operand.hbm [shape: f32[1000,256], index: 2, kind: output, shape index: {}]  }
   0x1   :  { %9 = vsyncpa [#allocation3 + $0x1], 0 }
   0x2   :  { %10 = vsyncpa [#allocation4], 0 }
   0x3   :  { %12 = vsyncpa [#allocation4 + $0x1], 0  ;;  %s1626_s9 = smov 0   ;;  %s1628_s10 = smov 0  }
   0x4   :  { %s1630_s11 = smov 0   ;;  %s1632_s12 = smov 0  }
   0x5 LB: > { %s1647_s13 = sadd.s32 4294967295, %s1603_s12   ;;  %s1234_s14 = sadd.s32 4294967294, %s1603_s12   ;;  %s1603_s12 = sphi %s1632_s12, %s2558_s12   ;;  %s1599_s11 = sphi %s1630_s11, %s2557_s11   ;;  %s1595_s10 = sphi %s1628_s10, %s2556_s10   ;;  %s1591_s9 = sphi %s1626_s9, %s2555_s9  }
   0x6   : > { %s1651_s15 = sadd.s32 1, %s1603_s12   ;;  %s25_s16 = sadd.s32 1, %s1599_s11 }
   0x7   : > { %s22_s17 = ssub.s32 %s1603_s12, %s1651_s15  ;;  %p32_p0 = scmp.ne.s32.totalorder %s1599_s11, %s1595_s10 }
   0x8   : > { %p23_p1 = scmp.eq.s32.totalorder %s22_s17, 0  ;;  %p33_p2 = scmp.eq.s32.totalorder %s1603_s12, 0 }
   0x9   : > { %p38_p3 = scmp.ne.s32.totalorder %s1595_s10, %s1591_s9  ;;  %p39_p4 = scmp.eq.s32.totalorder %s1647_s13, 0 }
   0xa   : > { %s1663_s18 = scalar_select %p23_p1, %s1599_s11, %s25_s16  }
   0xb   : > { %p34_p5 = por %p33_p2, %p32_p0  ;;  %p1665_p6 = por %p39_p4, %p38_p3 }
   0xc   : > { %p83_p7 = scmp.eq.s32.totalorder %s1647_s13, 1  ;;  %p89_p8 = scmp.eq.s32.totalorder %s1234_s14, 1 }
   0xd   : > { %p2519_p11 = scmp.ge.s32.totalorder %s1603_s12, 2 }
   0xe   : > { %p1670_p9 = por %p83_p7, %p32_p0  ;;  %p1674_p10 = por %p89_p8, %p38_p3 }
   0xf   : > { %108 = sbr.rel (%p2519_p11) target bundleno = 57 (0x39), region = 20 }
  0x10   : > { %s2532_s21 = scalar_select %p1674_p10, 1, 0 }
  0x16   : > { %111 = sbr.rel (!%p34_p5) target bundleno = 57 (0x39), region = 24  ;;  %s112_s22 = sand.u32 (%p34_p5), 1, %s1599_s11  }
  0x17   : > { %s117_s23 = smul.u32 (%p34_p5), 63, %s1603_s12  ;;  %s1686_s28 = scalar_lea.sflag (%p34_p5), [#allocation3], %s112_s22 }
  0x18   : > { %s1262_s24 = smul.u32 (%p34_p5), 1008, %s112_s22 }
  0x19   : > { %s118_s25 = ssub.s32 (%p34_p5), 125, %s117_s23 }
  0x1a   : > { %p119_p12 = scmp.lt.s32.totalorder (%p34_p5), %s118_s25, 63  ;;  %s116_s29 = scalar_lea.vmem (%p34_p5), [#allocation2], %s1262_s24 }
  0x1d   : > { %s2560_s25 = smov (!%p119_p12, %s118_s25), 63 }
  0x1e   : > { %s1683_s26 = sshll.u32 %s2560_s25, 8 }
  0x1f   : > { %s124_s27 = ssub.s32 16128, %s1683_s26 }
  0x20   : > { %125 = vsyncadd %s1686_s28, %s124_s27  ;;  %p1239_p13 = scmp.ne.s32.totalorder %s1683_s26, 0  ;;  %s1260_s30 = smul.u32 16128, %s1603_s12 }
  0x21   : > { %s131_s3 = sshll.u32 %s116_s29, 4  ;;  %s1513_s16 = scalar_lea.hbm %s2516_s0, 32000  ;;  %s1696_s3 = int_to_ptr.vmem [resolvable:$true] %s131_s3 }
  0x22   : > { %s1694_s6 = scalar_lea.hbm %s2516_s0, %s1260_s30 }
  0x23   : > { %s1509_s7 = scalar_lea.hbm %s1694_s6, %s1683_s26  ;;  %p1514_p3 = scmp.lt.u32.totalorder %s1694_s6, %s2516_s0 }
  0x24   : > { %p1510_p0 = scmp.ne.s32.totalorder %s1694_s6, %s1509_s7  ;;  %p1515_p4 = scmp.lt.u32.totalorder %s1513_s16, %s1509_s7 }
  0x25   : > { %p1517_p7 = scmp.lt.u32.totalorder %s1509_s7, %s1694_s6 }
  0x26   : > { %p1511_p1 = pnand %p1510_p0, %p1239_p13  ;;  %p1516_p5 = por %p1515_p4, %p1514_p3 }
  0x28   : > { %p1512_p2 = pneg %p1511_p1  ;;  %p1518_p8 = por %p1517_p7, %p1516_p5 }
  0x2a   : > { %p1519_p12 = pnand %p1518_p8, %p1512_p2 }
  0x2c   : > { %1522 = shalt.err (!%p1519_p12)
}
  0x2d   : > { %s1523_s23 = scalar_lea.vmem %s1696_s3, %s1683_s26  ;;  %s1605_s24 = smov [#allocation2]  }
  0x2e   : > { %p1524_p0 = scmp.ne.s32.totalorder %s1696_s3, %s1523_s23  ;;  %s1527_s25 = sshll.u32 %s1605_s24, 4  ;;  %s1528_s25 = int_to_ptr.vmem [resolvable:$false] %s1527_s25 }
  0x2f   : > { %s1529_s27 = scalar_lea.vmem %s1528_s25, 32256  ;;  %p1530_p10 = scmp.lt.s32.totalorder %s1696_s3, %s1528_s25 }
  0x30   : > { %p1525_p1 = pnand %p1524_p0, %p1239_p13  ;;  %p1531_p3 = scmp.lt.s32.totalorder %s1529_s27, %s1523_s23 }
  0x32   : > { %p1526_p11 = pneg %p1525_p1  ;;  %p1532_p4 = por %p1531_p3, %p1530_p10 }
  0x34   : > { %p1533_p5 = pnand %p1532_p4, %p1526_p11 }
  0x36   : > { %1536 = shalt.err (!%p1533_p5)
}
  0x37   : > { %s1606_s29 = smov 256   ;;  %s1607_s30 = smov 16  }
  0x38   : > { %137 = dma.hbm_to_vmem [thread:$0]  (%p1239_p13), %s1694_s6, %s1683_s26, %s1696_s3, %s1686_s28, %s1606_s29, %s1606_s29, %s1607_s30  }
  0x39 PF: > { %p1244_p2 = scmp.ge.s32.totalorder %s1603_s12, 1  ;;  %p139_p7 = scmp.lt.s32.totalorder %s1603_s12, 3 }
  0x3b   : > { %p140_p8 = pnand %p1244_p2, %p139_p7 }
  0x3d   : > { %143 = sbr.rel (%p140_p8) target bundleno = 390 (0x186), region = 28 }
  0x44   : > { %s1726_s4 = sand.u32 1, %s1595_s10  }
  0x45   : > { %s1263_s5 = smul.u32 1008, %s1726_s4  ;;  %s146_s7 = scalar_lea.sflag [#allocation3], %s1726_s4 }
  0x47   : > { %s1732_s8 = scalar_lea.vmem [#allocation2], %s1263_s5 }
  0x48   : > { %1582 = dma.done.wait (%p1665_p6), %s146_s7, 16128  }
  0x49   : > { %1584 = vsyncadd (%p1665_p6), %s146_s7, 4294951168  ;;  %v1739_v0 = vld [vmem:[%s1732_s8] sm:$0xff]  ;;  %v1742_v1 = vld [vmem:[%s1732_s8 + $0x8] sm:$0xff]  ;;  %s2081_s28 = scalar_lea.vmem [#allocation5], %s1263_s5  ;;  %s1140_s3 = scalar_lea.sflag [#allocation4], %s1726_s4 }
  0x4a   : > { %v1745_v2 = vld [vmem:[%s1732_s8 + $0x20] sm:$0xff]  ;;  %v308_v3 = vmul.f32 %v1739_v0, %v1739_v0  ;;  %v309_v4 = vmul.f32 %v1742_v1, %v1742_v1  ;;  %v1752_v5 = vld [vmem:[%s1732_s8 + $0x28] sm:$0xff]  ;;  %v1757_v7 = vld [vmem:[%s1732_s8 + $0x10] sm:$0xff]  ;;  %s1147_s6 = smul.u32 (%p1670_p9), 63, %s1647_s13 }
  0x4b   : > { %v312_v6 = vmul.f32 %v1745_v2, %v1745_v2  ;;  %v1760_v8 = vld [vmem:[%s1732_s8 + $0x18] sm:$0xff]  ;;  %v313_v9 = vmul.f32 %v1752_v5, %v1752_v5  ;;  %v310_v10 = vmul.f32 %v1757_v7, %v1757_v7  ;;  %v1769_v12 = vld [vmem:[%s1732_s8 + $0x30] sm:$0xff]  ;;  %v1775_v14 = vld [vmem:[%s1732_s8 + $0x40] sm:$0xff] }
  0x4c   : > { %v311_v11 = vmul.f32 %v1760_v8, %v1760_v8  ;;  %v1772_v13 = vld [vmem:[%s1732_s8 + $0x38] sm:$0xff]  ;;  %v434_v15 = vadd.f32 %v309_v4, %v308_v3  ;;  %v314_v16 = vmul.f32 %v1769_v12, %v1769_v12  ;;  %v1782_v18 = vld [vmem:[%s1732_s8 + $0x48] sm:$0xff]  ;;  %v1785_v19 = vld [vmem:[%s1732_s8 + $0x50] sm:$0xff]  ;;  %v316_v23 = vmul.f32 %v1775_v14, %v1775_v14  ;;  %s1148_s14 = ssub.s32 (%p1670_p9), 125, %s1147_s6 }
  0x4d   : > { %v315_v17 = vmul.f32 %v1772_v13, %v1772_v13  ;;  %v1788_v20 = vld [vmem:[%s1732_s8 + $0x58] sm:$0xff]  ;;  %v440_v21 = vadd.f32 %v313_v9, %v312_v6  ;;  %v317_v24 = vmul.f32 %v1782_v18, %v1782_v18  ;;  %v318_v26 = vmul.f32 %v1785_v19, %v1785_v19  ;;  %v1799_v28 = vld [vmem:[%s1732_s8 + $0x60] sm:$0xff]  ;;  %v1802_v29 = vld [vmem:[%s1732_s8 + $0x68] sm:$0xff]  ;;  %p1149_p6 = scmp.lt.s32.totalorder (%p1670_p9), %s1148_s14, 63 }
  0x4e   : > { %435 = vadd.xlane.f32.xlu0 %v434_v15  ;;  %v437_v22 = vadd.f32 %v311_v11, %v310_v10  ;;  %v319_v27 = vmul.f32 %v1788_v20, %v1788_v20  ;;  %v1805_v30 = vld [vmem:[%s1732_s8 + $0x70] sm:$0xff]  ;;  %v1808_v31 = vld [vmem:[%s1732_s8 + $0x78] sm:$0xff]  ;;  %v320_v33 = vmul.f32 %v1799_v28, %v1799_v28  ;;  %v321_v34 = vmul.f32 %v1802_v29, %v1802_v29  ;;  %v1819_v38 = vld [vmem:[%s1732_s8 + $0x80] sm:$0xff] }
  0x4f   : > { %441 = vadd.xlane.f32.xlu1 %v440_v21  ;;  %v443_v25 = vadd.f32 %v315_v17, %v314_v16  ;;  %v446_v32 = vadd.f32 %v317_v24, %v316_v23  ;;  %v322_v36 = vmul.f32 %v1805_v30, %v1805_v30  ;;  %v323_v37 = vmul.f32 %v1808_v31, %v1808_v31  ;;  %v1822_v39 = vld [vmem:[%s1732_s8 + $0x88] sm:$0xff]  ;;  %v1825_v40 = vld [vmem:[%s1732_s8 + $0x90] sm:$0xff]  ;;  %v1828_v41 = vld [vmem:[%s1732_s8 + $0x98] sm:$0xff] }
  0x50   : > { %v449_v35 = vadd.f32 %v319_v27, %v318_v26  ;;  %v452_v42 = vadd.f32 %v321_v34, %v320_v33  ;;  %v324_v43 = vmul.f32 %v1819_v38, %v1819_v38  ;;  %v325_v44 = vmul.f32 %v1822_v39, %v1822_v39  ;;  %v1839_v48 = vld [vmem:[%s1732_s8 + $0xa0] sm:$0xff]  ;;  %v1842_v49 = vld [vmem:[%s1732_s8 + $0xa8] sm:$0xff]  ;;  %v1845_v50 = vld [vmem:[%s1732_s8 + $0xb0] sm:$0xff] }
  0x51   : > { %v455_v45 = vadd.f32 %v323_v37, %v322_v36  ;;  %v326_v46 = vmul.f32 %v1825_v40, %v1825_v40  ;;  %v327_v47 = vmul.f32 %v1828_v41, %v1828_v41  ;;  %v1848_v51 = vld [vmem:[%s1732_s8 + $0xb8] sm:$0xff]  ;;  %v328_v53 = vmul.f32 %v1839_v48, %v1839_v48  ;;  %v1859_v58 = vld [vmem:[%s1732_s8 + $0xc0] sm:$0xff]  ;;  %v1862_v59 = vld [vmem:[%s1732_s8 + $0xc8] sm:$0xff] }
  0x52   : > { %438 = vadd.xlane.f32.xlu0 %v437_v22  ;;  %v458_v52 = vadd.f32 %v325_v44, %v324_v43  ;;  %v329_v54 = vmul.f32 %v1842_v49, %v1842_v49  ;;  %v330_v56 = vmul.f32 %v1845_v50, %v1845_v50  ;;  %v331_v57 = vmul.f32 %v1848_v51, %v1848_v51  ;;  %v1865_v60 = vld [vmem:[%s1732_s8 + $0xd0] sm:$0xff]  ;;  %v1868_v61 = vld [vmem:[%s1732_s8 + $0xd8] sm:$0xff]  ;;  %v1879_v10 = vld [vmem:[%s1732_s8 + $0xe0] sm:$0xff] }
  0x53   : > { %444 = vadd.xlane.f32.xlu1 %v443_v25  ;;  %v461_v55 = vadd.f32 %v327_v47, %v326_v46  ;;  %v332_v63 = vmul.f32 %v1859_v58, %v1859_v58  ;;  %v333_v3 = vmul.f32 %v1862_v59, %v1862_v59  ;;  %v334_v6 = vmul.f32 %v1865_v60, %v1865_v60  ;;  %v1882_v11 = vld [vmem:[%s1732_s8 + $0xe8] sm:$0xff]  ;;  %v1885_v15 = vld [vmem:[%s1732_s8 + $0xf0] sm:$0xff]  ;;  %v1888_v16 = vld [vmem:[%s1732_s8 + $0xf8] sm:$0xff] }
  0x54   : > { %v464_v62 = vadd.f32 %v329_v54, %v328_v53  ;;  %v467_v4 = vadd.f32 %v331_v57, %v330_v56  ;;  %v335_v9 = vmul.f32 %v1868_v61, %v1868_v61  ;;  %v336_v21 = vmul.f32 %v1879_v10, %v1879_v10  ;;  %v1899_v26 = vld [vmem:[%s1732_s8 + $0x100] sm:$0xff]  ;;  %v1902_v27 = vld [vmem:[%s1732_s8 + $0x108] sm:$0xff]  ;;  %v1908_v33 = vld [vmem:[%s1732_s8 + $0x118] sm:$0xff] }
  0x55   : > { %v470_v17 = vadd.f32 %v333_v3, %v332_v63  ;;  %v337_v22 = vmul.f32 %v1882_v11, %v1882_v11  ;;  %v338_v24 = vmul.f32 %v1885_v15, %v1885_v15  ;;  %v339_v25 = vmul.f32 %v1888_v16, %v1888_v16  ;;  %v1919_v44 = vld [vmem:[%s1732_s8 + $0x120] sm:$0xff]  ;;  %v1925_v46 = vld [vmem:[%s1732_s8 + $0x130] sm:$0xff]  ;;  %v1928_v47 = vld [vmem:[%s1732_s8 + $0x138] sm:$0xff] }
  0x56   : > { %447 = vadd.xlane.f32.xlu0 %v446_v32  ;;  %v473_v23 = vadd.f32 %v335_v9, %v334_v6  ;;  %v1905_v32 = vld [vmem:[%s1732_s8 + $0x110] sm:$0xff]  ;;  %v341_v36 = vmul.f32 %v1902_v27, %v1902_v27  ;;  %v343_v43 = vmul.f32 %v1908_v33, %v1908_v33  ;;  %v344_v53 = vmul.f32 %v1919_v44, %v1919_v44  ;;  %v1942_v63 = vld [vmem:[%s1732_s8 + $0x148] sm:$0xff] }
  0x57   : > { %450 = vadd.xlane.f32.xlu1 %v449_v35  ;;  %v476_v34 = vadd.f32 %v337_v22, %v336_v21  ;;  %v340_v35 = vmul.f32 %v1899_v26, %v1899_v26  ;;  %v479_v37 = vadd.f32 %v339_v25, %v338_v24  ;;  %v346_v56 = vmul.f32 %v1925_v46, %v1925_v46  ;;  %v1945_v3 = vld [vmem:[%s1732_s8 + $0x150] sm:$0xff]  ;;  %v1959_v24 = vld [vmem:[%s1732_s8 + $0x160] sm:$0xff]  ;;  %v1962_v25 = vld [vmem:[%s1732_s8 + $0x168] sm:$0xff] }
  0x58   : > { %v347_v57 = vmul.f32 %v1928_v47, %v1928_v47  ;;  %2534 = vst [vmem:[#allocation9_spill] sm:$0xff] %v1942_v63  ;;  %2535 = vst [vmem:[#allocation10_spill] sm:$0xff] %v1945_v3  ;;  %v350_v22 = vmul.f32 %v1945_v3, %v1945_v3 }
  0x59   : > { %2537 = vst [vmem:[#allocation12_spill] sm:$0xff] %v1959_v24  ;;  %2538 = vst [vmem:[#allocation13_spill] sm:$0xff] %v1962_v25 }
  0x5a   : > { %453 = vadd.xlane.f32.xlu0 %v452_v42  ;;  %v342_v42 = vmul.f32 %v1905_v32, %v1905_v32  ;;  %v491_v21 = vadd.f32 %v347_v57, %v346_v56  ;;  %v232_v56 = vld [vmem:[%s1732_s8 + $0x190] sm:$0xff]  ;;  %v233_v57 = vld [vmem:[%s1732_s8 + $0x198] sm:$0xff] }
  0x5b   : > { %456 = vadd.xlane.f32.xlu1 %v455_v45  ;;  %v1922_v45 = vld [vmem:[%s1732_s8 + $0x128] sm:$0xff] }
  0x5c   : > { %v345_v54 = vmul.f32 %v1922_v45, %v1922_v45 }
  0x5e   : > { %459 = vadd.xlane.f32.xlu0 %v458_v52  ;;  %v482_v52 = vadd.f32 %v341_v36, %v340_v35  ;;  %v488_v6 = vadd.f32 %v345_v54, %v344_v53  ;;  %v1968_v35 = vld [vmem:[%s1732_s8 + $0x178] sm:$0xff]  ;;  %v1979_v54 = vld [vmem:[%s1732_s8 + $0x180] sm:$0xff] }
  0x5f   : > { %462 = vadd.xlane.f32.xlu1 %v461_v55  ;;  %v485_v55 = vadd.f32 %v343_v43, %v342_v42  ;;  %2540 = vst [vmem:[#allocation15_spill] sm:$0xff] %v1968_v35  ;;  %v353_v42 = vmul.f32 %v1962_v25, %v1962_v25  ;;  %v355_v53 = vmul.f32 %v1968_v35, %v1968_v35  ;;  %2541 = vst [vmem:[#allocation16_spill] sm:$0xff] %v1979_v54  ;;  %v234_v35 = vld [vmem:[%s1732_s8 + $0x1a0] sm:$0xff]  ;;  %v236_v25 = vld [vmem:[%s1732_s8 + $0x1b0] sm:$0xff] }
  0x62   : > { %465 = vadd.xlane.f32.xlu0 %v464_v62  ;;  %v1939_v62 = vld [vmem:[%s1732_s8 + $0x140] sm:$0xff] }
  0x63   : > { %468 = vadd.xlane.f32.xlu1 %v467_v4  ;;  %2533 = vst [vmem:[#allocation8_spill] sm:$0xff] %v1939_v62  ;;  %v1948_v4 = vld [vmem:[%s1732_s8 + $0x158] sm:$0xff]  ;;  %v348_v9 = vmul.f32 %v1939_v62, %v1939_v62 }
  0x64   : > { %2536 = vst [vmem:[#allocation11_spill] sm:$0xff] %v1948_v4 }
  0x66   : > { %471 = vadd.xlane.f32.xlu0 %v470_v17  ;;  %v349_v17 = vmul.f32 %v1942_v63, %v1942_v63 }
  0x67   : > { %474 = vadd.xlane.f32.xlu1 %v473_v23  ;;  %v351_v23 = vmul.f32 %v1948_v4, %v1948_v4 }
  0x68   : > { %v494_v36 = vadd.f32 %v349_v17, %v348_v9  ;;  %v356_v9 = vmul.f32 %v1979_v54, %v1979_v54 }
  0x69   : > { %v497_v43 = vadd.f32 %v351_v23, %v350_v22  ;;  %v358_v22 = vmul.f32 %v232_v56, %v232_v56  ;;  %v359_v23 = vmul.f32 %v233_v57, %v233_v57  ;;  %v239_v56 = vld [vmem:[%s1732_s8 + $0x1c8] sm:$0xff]  ;;  %v240_v57 = vld [vmem:[%s1732_s8 + $0x1d0] sm:$0xff] }
  0x6a   : > { %477 = vadd.xlane.f32.xlu0 %v476_v34  ;;  %v1965_v34 = vld [vmem:[%s1732_s8 + $0x170] sm:$0xff]  ;;  %v365_v63 = vmul.f32 %v239_v56, %v239_v56 }
  0x6b   : > { %480 = vadd.xlane.f32.xlu1 %v479_v37  ;;  %2539 = vst [vmem:[#allocation14_spill] sm:$0xff] %v1965_v34  ;;  %v352_v37 = vmul.f32 %v1959_v24, %v1959_v24  ;;  %v237_v24 = vld [vmem:[%s1732_s8 + $0x1b8] sm:$0xff]  ;;  %v509_v54 = vadd.f32 %v359_v23, %v358_v22 }
  0x6e   : > { %483 = vadd.xlane.f32.xlu0 %v482_v52  ;;  %v354_v52 = vmul.f32 %v1965_v34, %v1965_v34  ;;  %v235_v34 = vld [vmem:[%s1732_s8 + $0x1a8] sm:$0xff] }
  0x6f   : > { %486 = vadd.xlane.f32.xlu1 %v485_v55  ;;  %v1982_v55 = vld [vmem:[%s1732_s8 + $0x188] sm:$0xff] }
  0x70   : > { %2542 = vst [vmem:[#allocation17_spill] sm:$0xff] %v1982_v55  ;;  %v357_v17 = vmul.f32 %v1982_v55, %v1982_v55  ;;  %v241_v55 = vld [vmem:[%s1732_s8 + $0x1d8] sm:$0xff] }
  0x72   : > { %489 = vadd.xlane.f32.xlu0 %v488_v6  ;;  %v500_v6 = vadd.f32 %v353_v42, %v352_v37  ;;  %v360_v37 = vmul.f32 %v234_v35, %v234_v35  ;;  %v361_v42 = vmul.f32 %v235_v34, %v235_v34  ;;  %v366_v34 = vmul.f32 %v240_v57, %v240_v57 }
  0x73   : > { %492 = vadd.xlane.f32.xlu1 %v491_v21  ;;  %v503_v21 = vadd.f32 %v355_v53, %v354_v52  ;;  %v363_v52 = vmul.f32 %v237_v24, %v237_v24  ;;  %v238_v53 = vld [vmem:[%s1732_s8 + $0x1c0] sm:$0xff]  ;;  %v244_v24 = vld [vmem:[%s1732_s8 + $0x1f0] sm:$0xff] }
  0x74   : > { %v512_v4 = vadd.f32 %v361_v42, %v360_v37  ;;  %v364_v3 = vmul.f32 %v238_v53, %v238_v53  ;;  %v246_v42 = vld [vmem:[%s1732_s8 + $0x200] sm:$0xff] }
  0x75   : > { %v372_v56 = vmul.f32 %v246_v42, %v246_v42  ;;  %v257_v42 = vld [vmem:[%s1732_s8 + $0x258] sm:$0xff] }
  0x76   : > { %495 = vadd.xlane.f32.xlu0 %v494_v36  ;;  %v506_v36 = vadd.f32 %v357_v17, %v356_v9  ;;  %v243_v9 = vld [vmem:[%s1732_s8 + $0x1e8] sm:$0xff]  ;;  %v245_v17 = vld [vmem:[%s1732_s8 + $0x1f8] sm:$0xff] }
  0x77   : > { %498 = vadd.xlane.f32.xlu1 %v497_v43  ;;  %v362_v43 = vmul.f32 %v236_v25, %v236_v25  ;;  %v242_v25 = vld [vmem:[%s1732_s8 + $0x1e0] sm:$0xff]  ;;  %v369_v23 = vmul.f32 %v243_v9, %v243_v9  ;;  %v371_v37 = vmul.f32 %v245_v17, %v245_v17 }
  0x78   : > { %v368_v22 = vmul.f32 %v242_v25, %v242_v25  ;;  %v253_v25 = vld [vmem:[%s1732_s8 + $0x238] sm:$0xff] }
  0x79   : > { %v515_v35 = vadd.f32 %v363_v52, %v362_v43  ;;  %v247_v43 = vld [vmem:[%s1732_s8 + $0x208] sm:$0xff]  ;;  %v249_v52 = vld [vmem:[%s1732_s8 + $0x218] sm:$0xff] }
  0x7a   : > { %501 = vadd.xlane.f32.xlu0 %v500_v6  ;;  %v367_v6 = vmul.f32 %v241_v55, %v241_v55  ;;  %v248_v55 = vld [vmem:[%s1732_s8 + $0x210] sm:$0xff]  ;;  %v524_v53 = vadd.f32 %v369_v23, %v368_v22  ;;  %v373_v57 = vmul.f32 %v247_v43, %v247_v43  ;;  %v379_v23 = vmul.f32 %v253_v25, %v253_v25 }
  0x7b   : > { %504 = vadd.xlane.f32.xlu1 %v503_v21  ;;  %v518_v21 = vadd.f32 %v365_v63, %v364_v3  ;;  %v374_v3 = vmul.f32 %v248_v55, %v248_v55 }
  0x7c   : > { %v530_v9 = vadd.f32 %v373_v57, %v372_v56  ;;  %v383_v57 = vmul.f32 %v257_v42, %v257_v42 }
  0x7e   : > { %507 = vadd.xlane.f32.xlu0 %v506_v36  ;;  %v521_v36 = vadd.f32 %v367_v6, %v366_v34  ;;  %v251_v34 = vld [vmem:[%s1732_s8 + $0x228] sm:$0xff]  ;;  %v252_v6 = vld [vmem:[%s1732_s8 + $0x230] sm:$0xff] }
  0x7f   : > { %510 = vadd.xlane.f32.xlu1 %v509_v54  ;;  %v370_v54 = vmul.f32 %v244_v24, %v244_v24  ;;  %v377_v17 = vmul.f32 %v251_v34, %v251_v34  ;;  %v378_v22 = vmul.f32 %v252_v6, %v252_v6 }
  0x81   : > { %v527_v63 = vadd.f32 %v371_v37, %v370_v54  ;;  %v255_v54 = vld [vmem:[%s1732_s8 + $0x248] sm:$0xff]  ;;  %v256_v37 = vld [vmem:[%s1732_s8 + $0x250] sm:$0xff] }
  0x82   : > { %513 = vadd.xlane.f32.xlu0 %v512_v4  ;;  %v375_v4 = vmul.f32 %v249_v52, %v249_v52  ;;  %v381_v52 = vmul.f32 %v255_v54, %v255_v54  ;;  %v382_v56 = vmul.f32 %v256_v37, %v256_v37 }
  0x83   : > { %516 = vadd.xlane.f32.xlu1 %v515_v35  ;;  %v250_v35 = vld [vmem:[%s1732_s8 + $0x220] sm:$0xff] }
  0x84   : > { %v376_v24 = vmul.f32 %v250_v35, %v250_v35  ;;  %v261_v35 = vld [vmem:[%s1732_s8 + $0x278] sm:$0xff] }
  0x86   : > { %519 = vadd.xlane.f32.xlu0 %v518_v21  ;;  %v533_v21 = vadd.f32 %v375_v4, %v374_v3  ;;  %v536_v43 = vadd.f32 %v377_v17, %v376_v24  ;;  %v259_v3 = vld [vmem:[%s1732_s8 + $0x268] sm:$0xff]  ;;  %v260_v4 = vld [vmem:[%s1732_s8 + $0x270] sm:$0xff]  ;;  %v387_v17 = vmul.f32 %v261_v35, %v261_v35 }
  0x87   : > { %522 = vadd.xlane.f32.xlu1 %v521_v36  ;;  %v254_v36 = vld [vmem:[%s1732_s8 + $0x240] sm:$0xff]  ;;  %v385_v25 = vmul.f32 %v259_v3, %v259_v3  ;;  %v386_v24 = vmul.f32 %v260_v4, %v260_v4 }
  0x88   : > { %v380_v55 = vmul.f32 %v254_v36, %v254_v36  ;;  %v265_v36 = vld [vmem:[%s1732_s8 + $0x298] sm:$0xff] }
  0x8a   : > { %525 = vadd.xlane.f32.xlu0 %v524_v53  ;;  %v539_v53 = vadd.f32 %v379_v23, %v378_v22  ;;  %v542_v34 = vadd.f32 %v381_v52, %v380_v55  ;;  %v263_v22 = vld [vmem:[%s1732_s8 + $0x288] sm:$0xff]  ;;  %v264_v23 = vld [vmem:[%s1732_s8 + $0x290] sm:$0xff]  ;;  %v391_v52 = vmul.f32 %v265_v36, %v265_v36 }
  0x8b   : > { %528 = vadd.xlane.f32.xlu1 %v527_v63  ;;  %v258_v63 = vld [vmem:[%s1732_s8 + $0x260] sm:$0xff]  ;;  %v389_v42 = vmul.f32 %v263_v22, %v263_v22  ;;  %v390_v55 = vmul.f32 %v264_v23, %v264_v23 }
  0x8c   : > { %v384_v6 = vmul.f32 %v258_v63, %v258_v63  ;;  %v269_v63 = vld [vmem:[%s1732_s8 + $0x2b8] sm:$0xff] }
  0x8e   : > { %531 = vadd.xlane.f32.xlu0 %v530_v9  ;;  %v545_v9 = vadd.f32 %v383_v57, %v382_v56  ;;  %v548_v54 = vadd.f32 %v385_v25, %v384_v6  ;;  %v267_v56 = vld [vmem:[%s1732_s8 + $0x2a8] sm:$0xff]  ;;  %v268_v57 = vld [vmem:[%s1732_s8 + $0x2b0] sm:$0xff]  ;;  %v395_v25 = vmul.f32 %v269_v63, %v269_v63 }
  0x8f   : > { %534 = vadd.xlane.f32.xlu1 %v533_v21  ;;  %v262_v21 = vld [vmem:[%s1732_s8 + $0x280] sm:$0xff]  ;;  %v393_v35 = vmul.f32 %v267_v56, %v267_v56  ;;  %v394_v6 = vmul.f32 %v268_v57, %v268_v57 }
  0x90   : > { %v388_v37 = vmul.f32 %v262_v21, %v262_v21  ;;  %v273_v21 = vld [vmem:[%s1732_s8 + $0x2d8] sm:$0xff] }
  0x92   : > { %537 = vadd.xlane.f32.xlu0 %v536_v43  ;;  %v551_v43 = vadd.f32 %v387_v17, %v386_v24  ;;  %v554_v3 = vadd.f32 %v389_v42, %v388_v37  ;;  %v271_v24 = vld [vmem:[%s1732_s8 + $0x2c8] sm:$0xff]  ;;  %v272_v17 = vld [vmem:[%s1732_s8 + $0x2d0] sm:$0xff]  ;;  %v399_v42 = vmul.f32 %v273_v21, %v273_v21 }
  0x93   : > { %540 = vadd.xlane.f32.xlu1 %v539_v53  ;;  %v266_v53 = vld [vmem:[%s1732_s8 + $0x2a0] sm:$0xff]  ;;  %v397_v36 = vmul.f32 %v271_v24, %v271_v24  ;;  %v398_v37 = vmul.f32 %v272_v17, %v272_v17 }
  0x94   : > { %v392_v4 = vmul.f32 %v266_v53, %v266_v53  ;;  %v277_v53 = vld [vmem:[%s1732_s8 + $0x2f8] sm:$0xff] }
  0x96   : > { %543 = vadd.xlane.f32.xlu0 %v542_v34  ;;  %v557_v34 = vadd.f32 %v391_v52, %v390_v55  ;;  %v560_v22 = vadd.f32 %v393_v35, %v392_v4  ;;  %v275_v55 = vld [vmem:[%s1732_s8 + $0x2e8] sm:$0xff]  ;;  %v276_v52 = vld [vmem:[%s1732_s8 + $0x2f0] sm:$0xff]  ;;  %v403_v35 = vmul.f32 %v277_v53, %v277_v53 }
  0x97   : > { %546 = vadd.xlane.f32.xlu1 %v545_v9  ;;  %v270_v9 = vld [vmem:[%s1732_s8 + $0x2c0] sm:$0xff]  ;;  %v401_v63 = vmul.f32 %v275_v55, %v275_v55  ;;  %v402_v4 = vmul.f32 %v276_v52, %v276_v52 }
  0x98   : > { %v396_v23 = vmul.f32 %v270_v9, %v270_v9  ;;  %v281_v9 = vld [vmem:[%s1732_s8 + $0x318] sm:$0xff] }
  0x9a   : > { %549 = vadd.xlane.f32.xlu0 %v548_v54  ;;  %v563_v54 = vadd.f32 %v395_v25, %v394_v6  ;;  %v566_v56 = vadd.f32 %v397_v36, %v396_v23  ;;  %v279_v6 = vld [vmem:[%s1732_s8 + $0x308] sm:$0xff]  ;;  %v280_v25 = vld [vmem:[%s1732_s8 + $0x310] sm:$0xff]  ;;  %v407_v36 = vmul.f32 %v281_v9, %v281_v9 }
  0x9b   : > { %552 = vadd.xlane.f32.xlu1 %v551_v43  ;;  %v274_v43 = vld [vmem:[%s1732_s8 + $0x2e0] sm:$0xff]  ;;  %v405_v21 = vmul.f32 %v279_v6, %v279_v6  ;;  %v406_v23 = vmul.f32 %v280_v25, %v280_v25 }
  0x9c   : > { %v400_v57 = vmul.f32 %v274_v43, %v274_v43  ;;  %v285_v43 = vld [vmem:[%s1732_s8 + $0x338] sm:$0xff] }
  0x9e   : > { %555 = vadd.xlane.f32.xlu0 %v554_v3  ;;  %v569_v3 = vadd.f32 %v399_v42, %v398_v37  ;;  %v572_v24 = vadd.f32 %v401_v63, %v400_v57  ;;  %v283_v37 = vld [vmem:[%s1732_s8 + $0x328] sm:$0xff]  ;;  %v284_v42 = vld [vmem:[%s1732_s8 + $0x330] sm:$0xff]  ;;  %v411_v63 = vmul.f32 %v285_v43, %v285_v43 }
  0x9f   : > { %558 = vadd.xlane.f32.xlu1 %v557_v34  ;;  %v278_v34 = vld [vmem:[%s1732_s8 + $0x300] sm:$0xff]  ;;  %v409_v53 = vmul.f32 %v283_v37, %v283_v37  ;;  %v410_v57 = vmul.f32 %v284_v42, %v284_v42 }
  0xa0   : > { %v404_v17 = vmul.f32 %v278_v34, %v278_v34  ;;  %v289_v34 = vld [vmem:[%s1732_s8 + $0x358] sm:$0xff] }
  0xa2   : > { %561 = vadd.xlane.f32.xlu0 %v560_v22  ;;  %v575_v22 = vadd.f32 %v403_v35, %v402_v4  ;;  %v578_v55 = vadd.f32 %v405_v21, %v404_v17  ;;  %v287_v4 = vld [vmem:[%s1732_s8 + $0x348] sm:$0xff]  ;;  %v288_v35 = vld [vmem:[%s1732_s8 + $0x350] sm:$0xff]  ;;  %v415_v21 = vmul.f32 %v289_v34, %v289_v34 }
  0xa3   : > { %564 = vadd.xlane.f32.xlu1 %v563_v54  ;;  %v282_v54 = vld [vmem:[%s1732_s8 + $0x320] sm:$0xff]  ;;  %v413_v9 = vmul.f32 %v287_v4, %v287_v4  ;;  %v414_v17 = vmul.f32 %v288_v35, %v288_v35 }
  0xa4   : > { %v408_v52 = vmul.f32 %v282_v54, %v282_v54  ;;  %v293_v54 = vld [vmem:[%s1732_s8 + $0x378] sm:$0xff] }
  0xa6   : > { %567 = vadd.xlane.f32.xlu0 %v566_v56  ;;  %v581_v56 = vadd.f32 %v407_v36, %v406_v23  ;;  %v584_v6 = vadd.f32 %v409_v53, %v408_v52  ;;  %v291_v23 = vld [vmem:[%s1732_s8 + $0x368] sm:$0xff]  ;;  %v292_v36 = vld [vmem:[%s1732_s8 + $0x370] sm:$0xff]  ;;  %v419_v53 = vmul.f32 %v293_v54, %v293_v54 }
  0xa7   : > { %570 = vadd.xlane.f32.xlu1 %v569_v3  ;;  %v286_v3 = vld [vmem:[%s1732_s8 + $0x340] sm:$0xff]  ;;  %v417_v43 = vmul.f32 %v291_v23, %v291_v23  ;;  %v418_v52 = vmul.f32 %v292_v36, %v292_v36 }
  0xa8   : > { %v412_v25 = vmul.f32 %v286_v3, %v286_v3  ;;  %v297_v3 = vld [vmem:[%s1732_s8 + $0x398] sm:$0xff] }
  0xaa   : > { %573 = vadd.xlane.f32.xlu0 %v572_v24  ;;  %v587_v24 = vadd.f32 %v411_v63, %v410_v57  ;;  %v590_v37 = vadd.f32 %v413_v9, %v412_v25  ;;  %v295_v57 = vld [vmem:[%s1732_s8 + $0x388] sm:$0xff]  ;;  %v296_v63 = vld [vmem:[%s1732_s8 + $0x390] sm:$0xff]  ;;  %v423_v9 = vmul.f32 %v297_v3, %v297_v3 }
  0xab   : > { %576 = vadd.xlane.f32.xlu1 %v575_v22  ;;  %v290_v22 = vld [vmem:[%s1732_s8 + $0x360] sm:$0xff]  ;;  %v421_v34 = vmul.f32 %v295_v57, %v295_v57  ;;  %v422_v25 = vmul.f32 %v296_v63, %v296_v63 }
  0xac   : > { %v416_v42 = vmul.f32 %v290_v22, %v290_v22  ;;  %v301_v22 = vld [vmem:[%s1732_s8 + $0x3b8] sm:$0xff] }
  0xae   : > { %579 = vadd.xlane.f32.xlu0 %v578_v55  ;;  %v593_v55 = vadd.f32 %v415_v21, %v414_v17  ;;  %v596_v4 = vadd.f32 %v417_v43, %v416_v42  ;;  %v299_v17 = vld [vmem:[%s1732_s8 + $0x3a8] sm:$0xff]  ;;  %v300_v21 = vld [vmem:[%s1732_s8 + $0x3b0] sm:$0xff]  ;;  %v427_v43 = vmul.f32 %v301_v22, %v301_v22  ;;  %v877_v22 = vlaneseq }
  0xaf   : > { %582 = vadd.xlane.f32.xlu1 %v581_v56  ;;  %v294_v56 = vld [vmem:[%s1732_s8 + $0x380] sm:$0xff]  ;;  %v425_v54 = vmul.f32 %v299_v17, %v299_v17  ;;  %v426_v42 = vmul.f32 %v300_v21, %v300_v21 }
  0xb0   : > { %v420_v35 = vmul.f32 %v294_v56, %v294_v56  ;;  %v305_v56 = vld [vmem:[%s1732_s8 + $0x3d8] sm:$0xff] }
  0xb1   : > { %v611_v62 = vadd.f32 %v427_v43, %v426_v42  ;;  %v878_v42 = vshrl.u32 %v877_v22, 7 }
  0xb2   : > { %585 = vadd.xlane.f32.xlu0 %v584_v6  ;;  %v599_v6 = vadd.f32 %v419_v53, %v418_v52  ;;  %v602_v23 = vadd.f32 %v421_v34, %v420_v35  ;;  %v303_v52 = vld [vmem:[%s1732_s8 + $0x3c8] sm:$0xff]  ;;  %v304_v53 = vld [vmem:[%s1732_s8 + $0x3d0] sm:$0xff]  ;;  %v431_v35 = vmul.f32 %v305_v56, %v305_v56  ;;  %v306_v34 = vld [vmem:[%s1732_s8 + $0x3e0] sm:$0xff] }
  0xb3   : > { %588 = vadd.xlane.f32.xlu1 %v587_v24  ;;  %v298_v24 = vld [vmem:[%s1732_s8 + $0x3a0] sm:$0xff]  ;;  %v429_v3 = vmul.f32 %v303_v52, %v303_v52  ;;  %v879_v56 = vsub.s32 0, %v878_v42 }
  0xb4   : > { %v424_v36 = vmul.f32 %v298_v24, %v298_v24  ;;  %v307_v24 = vld [vmem:[%s1732_s8 + $0x3e8] sm:$0xff] }
  0xb6   : > { %591 = vadd.xlane.f32.xlu0 %v590_v37  ;;  %v605_v37 = vadd.f32 %v423_v9, %v422_v25  ;;  %v608_v57 = vadd.f32 %v425_v54, %v424_v36  ;;  %v432_v25 = vmul.f32 %v306_v34, %v306_v34  ;;  %v433_v9 = vmul.f32 %v307_v24, %v307_v24 }
  0xb7   : > { %594 = vadd.xlane.f32.xlu1 %v593_v55  ;;  %v302_v55 = vld [vmem:[%s1732_s8 + $0x3c0] sm:$0xff] }
  0xb8   : > { %v428_v63 = vmul.f32 %v302_v55, %v302_v55  ;;  %v620_v21 = vadd.f32 %v433_v9, %v432_v25 }
  0xba   : > { %597 = vadd.xlane.f32.xlu0 %v596_v4  ;;  %v430_v4 = vmul.f32 %v304_v53, %v304_v53 }
  0xbb   : > { %600 = vadd.xlane.f32.xlu1 %v599_v6  ;;  %v614_v6 = vadd.f32 %v429_v3, %v428_v63  ;;  %v875_v63 = vld [vmem:[%s2517_s1] sm:$0x3] }
  0xbc   : > { %v617_v17 = vadd.f32 %v431_v35, %v430_v4  ;;  %v2067_v34 = vrot.slane %v875_v63, %v879_v56 }
  0xbe   : > { %603 = vadd.xlane.f32.xlu0 %v602_v23 }
  0xbf   : > { %606 = vadd.xlane.f32.xlu1 %v605_v37 }
  0xc2   : > { %609 = vadd.xlane.f32.xlu0 %v608_v57 }
  0xc3   : > { %612 = vadd.xlane.f32.xlu1 %v611_v62  ;;  %v883_v62 = vsub.s32 1, %v878_v42 }
  0xc5   : > { %v2069_v24 = vrot.slane %v875_v63, %v883_v62 }
  0xc6   : > { %615 = vadd.xlane.f32.xlu0 %v614_v6 }
  0xc7   : > { %618 = vadd.xlane.f32.xlu1 %v617_v17 }
  0xca   : > { %621 = vadd.xlane.f32.xlu0 %v620_v21 }
  0xdb   : > { %v436_v23 = vpop.xlane.xlu0 %435 }
  0xdc   : > { %v623_v36 = vmax.f32 %v436_v23, 1e-24  ;;  %v442_v54 = vpop.xlane.xlu1 %441 }
  0xdd   : > { %v625_v37 = vmax.f32 %v442_v54, 1e-24 }
  0xde   : > { %1307 = vrsqrt.f32 %v623_v36 }
  0xdf   : > { %1309 = vrsqrt.f32 %v625_v37  ;;  %v439_v43 = vpop.xlane.xlu0 %438 }
  0xe0   : > { %v624_v55 = vmax.f32 %v439_v43, 1e-24  ;;  %v445_v52 = vpop.xlane.xlu1 %444 }
  0xe1   : > { %v626_v53 = vmax.f32 %v445_v52, 1e-24 }
  0xe2   : > { %1311 = vrsqrt.f32 %v624_v55 }
  0xe3   : > { %1313 = vrsqrt.f32 %v626_v53  ;;  %v448_v57 = vpop.xlane.xlu0 %447 }
  0xe4   : > { %v627_v3 = vmax.f32 %v448_v57, 1e-24  ;;  %v451_v4 = vpop.xlane.xlu1 %450 }
  0xe5   : > { %v628_v35 = vmax.f32 %v451_v4, 1e-24 }
  0xe6   : > { %1315 = vrsqrt.f32 %v627_v3 }
  0xe7   : > { %1317 = vrsqrt.f32 %v628_v35  ;;  %v454_v6 = vpop.xlane.xlu0 %453 }
  0xe8   : > { %v1308_v25 = vpop.eup %1307  ;;  %v629_v9 = vmax.f32 %v454_v6, 1e-24  ;;  %v457_v17 = vpop.xlane.xlu1 %456 }
  0xe9   : > { %v1310_v21 = vpop.eup %1309  ;;  %v749_v22 = vmul.f32 %v1308_v25, %v1739_v0  ;;  %v750_v23 = vmul.f32 %v1308_v25, %v1742_v1  ;;  %v630_v36 = vmax.f32 %v457_v17, 1e-24 }
  0xea   : > { %v753_v54 = vmul.f32 %v1310_v21, %v1745_v2  ;;  %v754_v37 = vmul.f32 %v1310_v21, %v1752_v5  ;;  %1319 = vrsqrt.f32 %v629_v9 }
  0xeb   : > { %v887_v42 = vmul.f32 %v2067_v34, %v749_v22  ;;  %v888_v43 = vmul.f32 %v2069_v24, %v750_v23  ;;  %1321 = vrsqrt.f32 %v630_v36  ;;  %v460_v55 = vpop.xlane.xlu0 %459 }
  0xec   : > { %v1312_v52 = vpop.eup %1311  ;;  %v891_v53 = vmul.f32 %v2067_v34, %v753_v54  ;;  %v892_v0 = vmul.f32 %v2069_v24, %v754_v37  ;;  %v631_v56 = vmax.f32 %v460_v55, 1e-24  ;;  %v463_v62 = vpop.xlane.xlu1 %462 }
  0xed   : > { %v1314_v1 = vpop.eup %1313  ;;  %1013 = vst [vmem:[%s2081_s28] sm:$0xff] %v887_v42  ;;  %1014 = vst [vmem:[%s2081_s28 + $0x8] sm:$0xff] %v888_v43  ;;  %v751_v2 = vmul.f32 %v1312_v52, %v1757_v7  ;;  %v752_v5 = vmul.f32 %v1312_v52, %v1760_v8  ;;  %v632_v57 = vmax.f32 %v463_v62, 1e-24 }
  0xee   : > { %1017 = vst [vmem:[%s2081_s28 + $0x20] sm:$0xff] %v891_v53  ;;  %1018 = vst [vmem:[%s2081_s28 + $0x28] sm:$0xff] %v892_v0  ;;  %v755_v63 = vmul.f32 %v1314_v1, %v1769_v12  ;;  %v756_v3 = vmul.f32 %v1314_v1, %v1772_v13  ;;  %1323 = vrsqrt.f32 %v631_v56 }
  0xef   : > { %v889_v4 = vmul.f32 %v2067_v34, %v751_v2  ;;  %v890_v35 = vmul.f32 %v2069_v24, %v752_v5  ;;  %1325 = vrsqrt.f32 %v632_v57  ;;  %v466_v7 = vpop.xlane.xlu0 %465 }
  0xf0   : > { %v1316_v6 = vpop.eup %1315  ;;  %v893_v8 = vmul.f32 %v2067_v34, %v755_v63  ;;  %v894_v25 = vmul.f32 %v2069_v24, %v756_v3  ;;  %v633_v9 = vmax.f32 %v466_v7, 1e-24  ;;  %v469_v17 = vpop.xlane.xlu1 %468 }
  0xf1   : > { %v1318_v21 = vpop.eup %1317  ;;  %1015 = vst [vmem:[%s2081_s28 + $0x10] sm:$0xff] %v889_v4  ;;  %1016 = vst [vmem:[%s2081_s28 + $0x18] sm:$0xff] %v890_v35  ;;  %v757_v12 = vmul.f32 %v1316_v6, %v1775_v14  ;;  %v758_v13 = vmul.f32 %v1316_v6, %v1782_v18  ;;  %v634_v22 = vmax.f32 %v469_v17, 1e-24 }
  0xf2   : > { %1019 = vst [vmem:[%s2081_s28 + $0x30] sm:$0xff] %v893_v8  ;;  %1020 = vst [vmem:[%s2081_s28 + $0x38] sm:$0xff] %v894_v25  ;;  %v759_v23 = vmul.f32 %v1318_v21, %v1785_v19  ;;  %v760_v36 = vmul.f32 %v1318_v21, %v1788_v20  ;;  %1327 = vrsqrt.f32 %v633_v9 }
  0xf3   : > { %v895_v54 = vmul.f32 %v2067_v34, %v757_v12  ;;  %v896_v37 = vmul.f32 %v2069_v24, %v758_v13  ;;  %1329 = vrsqrt.f32 %v634_v22  ;;  %v472_v14 = vpop.xlane.xlu0 %471 }
  0xf4   : > { %v1320_v42 = vpop.eup %1319  ;;  %v897_v18 = vmul.f32 %v2067_v34, %v759_v23  ;;  %v898_v43 = vmul.f32 %v2069_v24, %v760_v36  ;;  %v635_v55 = vmax.f32 %v472_v14, 1e-24  ;;  %v475_v52 = vpop.xlane.xlu1 %474 }
  0xf5   : > { %v1322_v53 = vpop.eup %1321  ;;  %1021 = vst [vmem:[%s2081_s28 + $0x40] sm:$0xff] %v895_v54  ;;  %1022 = vst [vmem:[%s2081_s28 + $0x48] sm:$0xff] %v896_v37  ;;  %v761_v19 = vmul.f32 %v1320_v42, %v1799_v28  ;;  %v762_v20 = vmul.f32 %v1320_v42, %v1802_v29  ;;  %v636_v0 = vmax.f32 %v475_v52, 1e-24 }
  0xf6   : > { %1023 = vst [vmem:[%s2081_s28 + $0x50] sm:$0xff] %v897_v18  ;;  %1024 = vst [vmem:[%s2081_s28 + $0x58] sm:$0xff] %v898_v43  ;;  %v763_v56 = vmul.f32 %v1322_v53, %v1805_v30  ;;  %v764_v62 = vmul.f32 %v1322_v53, %v1808_v31  ;;  %1331 = vrsqrt.f32 %v635_v55 }
  0xf7   : > { %v899_v1 = vmul.f32 %v2067_v34, %v761_v19  ;;  %v900_v2 = vmul.f32 %v2069_v24, %v762_v20  ;;  %1333 = vrsqrt.f32 %v636_v0  ;;  %v478_v28 = vpop.xlane.xlu0 %477 }
  0xf8   : > { %v1324_v5 = vpop.eup %1323  ;;  %v901_v29 = vmul.f32 %v2067_v34, %v763_v56  ;;  %v902_v57 = vmul.f32 %v2069_v24, %v764_v62  ;;  %v637_v63 = vmax.f32 %v478_v28, 1e-24  ;;  %v481_v3 = vpop.xlane.xlu1 %480 }
  0xf9   : > { %v1326_v4 = vpop.eup %1325  ;;  %1025 = vst [vmem:[%s2081_s28 + $0x60] sm:$0xff] %v899_v1  ;;  %1026 = vst [vmem:[%s2081_s28 + $0x68] sm:$0xff] %v900_v2  ;;  %v765_v30 = vmul.f32 %v1324_v5, %v1819_v38  ;;  %v766_v31 = vmul.f32 %v1324_v5, %v1822_v39  ;;  %v638_v35 = vmax.f32 %v481_v3, 1e-24 }
  0xfa   : > { %1027 = vst [vmem:[%s2081_s28 + $0x70] sm:$0xff] %v901_v29  ;;  %1028 = vst [vmem:[%s2081_s28 + $0x78] sm:$0xff] %v902_v57  ;;  %v767_v7 = vmul.f32 %v1326_v4, %v1825_v40  ;;  %v768_v6 = vmul.f32 %v1326_v4, %v1828_v41  ;;  %1335 = vrsqrt.f32 %v637_v63 }
  0xfb   : > { %v903_v8 = vmul.f32 %v2067_v34, %v765_v30  ;;  %v904_v25 = vmul.f32 %v2069_v24, %v766_v31  ;;  %1337 = vrsqrt.f32 %v638_v35  ;;  %v484_v38 = vpop.xlane.xlu0 %483 }
  0xfc   : > { %v1328_v9 = vpop.eup %1327  ;;  %v905_v39 = vmul.f32 %v2067_v34, %v767_v7  ;;  %v906_v17 = vmul.f32 %v2069_v24, %v768_v6  ;;  %v639_v21 = vmax.f32 %v484_v38, 1e-24  ;;  %v487_v12 = vpop.xlane.xlu1 %486 }
  0xfd   : > { %v1330_v13 = vpop.eup %1329  ;;  %1029 = vst [vmem:[%s2081_s28 + $0x80] sm:$0xff] %v903_v8  ;;  %1030 = vst [vmem:[%s2081_s28 + $0x88] sm:$0xff] %v904_v25  ;;  %v769_v40 = vmul.f32 %v1328_v9, %v1839_v48  ;;  %v770_v41 = vmul.f32 %v1328_v9, %v1842_v49  ;;  %v640_v22 = vmax.f32 %v487_v12, 1e-24 }
  0xfe   : > { %1031 = vst [vmem:[%s2081_s28 + $0x90] sm:$0xff] %v905_v39  ;;  %1032 = vst [vmem:[%s2081_s28 + $0x98] sm:$0xff] %v906_v17  ;;  %v771_v23 = vmul.f32 %v1330_v13, %v1845_v50  ;;  %v772_v36 = vmul.f32 %v1330_v13, %v1848_v51  ;;  %1339 = vrsqrt.f32 %v639_v21 }
  0xff   : > { %v907_v54 = vmul.f32 %v2067_v34, %v769_v40  ;;  %v908_v37 = vmul.f32 %v2069_v24, %v770_v41  ;;  %1341 = vrsqrt.f32 %v640_v22  ;;  %v490_v48 = vpop.xlane.xlu0 %489 }
 0x100   : > { %v1332_v14 = vpop.eup %1331  ;;  %v909_v49 = vmul.f32 %v2067_v34, %v771_v23  ;;  %v910_v42 = vmul.f32 %v2069_v24, %v772_v36  ;;  %v641_v18 = vmax.f32 %v490_v48, 1e-24  ;;  %v493_v43 = vpop.xlane.xlu1 %492 }
 0x101   : > { %v1334_v55 = vpop.eup %1333  ;;  %1033 = vst [vmem:[%s2081_s28 + $0xa0] sm:$0xff] %v907_v54  ;;  %1034 = vst [vmem:[%s2081_s28 + $0xa8] sm:$0xff] %v908_v37  ;;  %v773_v50 = vmul.f32 %v1332_v14, %v1859_v58  ;;  %v774_v51 = vmul.f32 %v1332_v14, %v1862_v59  ;;  %v642_v52 = vmax.f32 %v493_v43, 1e-24 }
 0x102   : > { %1035 = vst [vmem:[%s2081_s28 + $0xb0] sm:$0xff] %v909_v49  ;;  %1036 = vst [vmem:[%s2081_s28 + $0xb8] sm:$0xff] %v910_v42  ;;  %v775_v53 = vmul.f32 %v1334_v55, %v1865_v60  ;;  %v776_v19 = vmul.f32 %v1334_v55, %v1868_v61  ;;  %1343 = vrsqrt.f32 %v641_v18  ;;  %v2544_v42 = vld [vmem:[#allocation9_spill] sm:$0xff]  ;;  %v2545_v55 = vld [vmem:[#allocation10_spill] sm:$0xff] }
 0x103   : > { %v911_v20 = vmul.f32 %v2067_v34, %v773_v50  ;;  %v912_v0 = vmul.f32 %v2069_v24, %v774_v51  ;;  %1345 = vrsqrt.f32 %v642_v52  ;;  %v496_v58 = vpop.xlane.xlu0 %495  ;;  %v2546_v51 = vld [vmem:[#allocation11_spill] sm:$0xff] }
 0x104   : > { %v1336_v56 = vpop.eup %1335  ;;  %v913_v59 = vmul.f32 %v2067_v34, %v775_v53  ;;  %v914_v62 = vmul.f32 %v2069_v24, %v776_v19  ;;  %v643_v1 = vmax.f32 %v496_v58, 1e-24  ;;  %v499_v2 = vpop.xlane.xlu1 %498 }
 0x105   : > { %v1338_v28 = vpop.eup %1337  ;;  %1037 = vst [vmem:[%s2081_s28 + $0xc0] sm:$0xff] %v911_v20  ;;  %1038 = vst [vmem:[%s2081_s28 + $0xc8] sm:$0xff] %v912_v0  ;;  %v777_v60 = vmul.f32 %v1336_v56, %v1879_v10  ;;  %v778_v61 = vmul.f32 %v1336_v56, %v1882_v11  ;;  %v644_v5 = vmax.f32 %v499_v2, 1e-24  ;;  %v2547_v2 = vld [vmem:[#allocation12_spill] sm:$0xff] }
 0x106   : > { %1039 = vst [vmem:[%s2081_s28 + $0xd0] sm:$0xff] %v913_v59  ;;  %1040 = vst [vmem:[%s2081_s28 + $0xd8] sm:$0xff] %v914_v62  ;;  %v779_v29 = vmul.f32 %v1338_v28, %v1885_v15  ;;  %v780_v57 = vmul.f32 %v1338_v28, %v1888_v16  ;;  %1347 = vrsqrt.f32 %v643_v1 }
 0x107   : > { %v915_v63 = vmul.f32 %v2067_v34, %v777_v60  ;;  %v916_v3 = vmul.f32 %v2069_v24, %v778_v61  ;;  %1349 = vrsqrt.f32 %v644_v5  ;;  %v502_v10 = vpop.xlane.xlu0 %501  ;;  %v2548_v60 = vld [vmem:[#allocation13_spill] sm:$0xff] }
 0x108   : > { %v1340_v4 = vpop.eup %1339  ;;  %v917_v11 = vmul.f32 %v2067_v34, %v779_v29  ;;  %v918_v30 = vmul.f32 %v2069_v24, %v780_v57  ;;  %v645_v31 = vmax.f32 %v502_v10, 1e-24  ;;  %v505_v35 = vpop.xlane.xlu1 %504  ;;  %v2549_v29 = vld [vmem:[#allocation14_spill] sm:$0xff] }
 0x109   : > { %v1342_v7 = vpop.eup %1341  ;;  %1041 = vst [vmem:[%s2081_s28 + $0xe0] sm:$0xff] %v915_v63  ;;  %1042 = vst [vmem:[%s2081_s28 + $0xe8] sm:$0xff] %v916_v3  ;;  %v781_v15 = vmul.f32 %v1340_v4, %v1899_v26  ;;  %v782_v16 = vmul.f32 %v1340_v4, %v1902_v27  ;;  %v646_v6 = vmax.f32 %v505_v35, 1e-24  ;;  %v2550_v63 = vld [vmem:[#allocation15_spill] sm:$0xff] }
 0x10a   : > { %1043 = vst [vmem:[%s2081_s28 + $0xf0] sm:$0xff] %v917_v11  ;;  %1044 = vst [vmem:[%s2081_s28 + $0xf8] sm:$0xff] %v918_v30  ;;  %v783_v8 = vmul.f32 %v1342_v7, %v1905_v32  ;;  %v784_v25 = vmul.f32 %v1342_v7, %v1908_v33  ;;  %1351 = vrsqrt.f32 %v645_v31 }
 0x10b   : > { %v919_v38 = vmul.f32 %v2067_v34, %v781_v15  ;;  %v920_v9 = vmul.f32 %v2069_v24, %v782_v16  ;;  %1353 = vrsqrt.f32 %v646_v6  ;;  %v508_v26 = vpop.xlane.xlu0 %507  ;;  %v2551_v6 = vld [vmem:[#allocation16_spill] sm:$0xff] }
 0x10c   : > { %v1344_v39 = vpop.eup %1343  ;;  %v921_v27 = vmul.f32 %v2067_v34, %v783_v8  ;;  %v922_v17 = vmul.f32 %v2069_v24, %v784_v25  ;;  %v647_v21 = vmax.f32 %v508_v26, 1e-24  ;;  %v511_v12 = vpop.xlane.xlu1 %510  ;;  %v2552_v25 = vld [vmem:[#allocation17_spill] sm:$0xff]  ;;  %v1433_v26 = vld [vmem:[%s1732_s8 + $0x190] sm:$0xff] }
 0x10d   : > { %v1346_v13 = vpop.eup %1345  ;;  %1045 = vst [vmem:[%s2081_s28 + $0x100] sm:$0xff] %v919_v38  ;;  %1046 = vst [vmem:[%s2081_s28 + $0x108] sm:$0xff] %v920_v9  ;;  %v785_v32 = vmul.f32 %v1344_v39, %v1919_v44  ;;  %v786_v33 = vmul.f32 %v1344_v39, %v1922_v45  ;;  %v648_v40 = vmax.f32 %v511_v12, 1e-24 }
 0x10e   : > { %1047 = vst [vmem:[%s2081_s28 + $0x110] sm:$0xff] %v921_v27  ;;  %1048 = vst [vmem:[%s2081_s28 + $0x118] sm:$0xff] %v922_v17  ;;  %v787_v41 = vmul.f32 %v1346_v13, %v1925_v46  ;;  %v788_v22 = vmul.f32 %v1346_v13, %v1928_v47  ;;  %1355 = vrsqrt.f32 %v647_v21  ;;  %v2543_v46 = vld [vmem:[#allocation8_spill] sm:$0xff]  ;;  %v1434_v27 = vld [vmem:[%s1732_s8 + $0x198] sm:$0xff] }
 0x10f   : > { %v923_v23 = vmul.f32 %v2067_v34, %v785_v32  ;;  %v924_v36 = vmul.f32 %v2069_v24, %v786_v33  ;;  %1357 = vrsqrt.f32 %v648_v40  ;;  %v514_v44 = vpop.xlane.xlu0 %513 }
 0x110   : > { %v1348_v54 = vpop.eup %1347  ;;  %v925_v45 = vmul.f32 %v2067_v34, %v787_v41  ;;  %v926_v37 = vmul.f32 %v2069_v24, %v788_v22  ;;  %v649_v48 = vmax.f32 %v514_v44, 1e-24  ;;  %v517_v14 = vpop.xlane.xlu1 %516 }
 0x111   : > { %v1350_v49 = vpop.eup %1349  ;;  %1049 = vst [vmem:[%s2081_s28 + $0x120] sm:$0xff] %v923_v23  ;;  %1050 = vst [vmem:[%s2081_s28 + $0x128] sm:$0xff] %v924_v36  ;;  %v789_v47 = vmul.f32 %v1348_v54, %v2543_v46  ;;  %v790_v18 = vmul.f32 %v1348_v54, %v2544_v42  ;;  %v650_v43 = vmax.f32 %v517_v14, 1e-24  ;;  %v1435_v36 = vld [vmem:[%s1732_s8 + $0x1a0] sm:$0xff]  ;;  %v1436_v54 = vld [vmem:[%s1732_s8 + $0x1a8] sm:$0xff] }
 0x112   : > { %1051 = vst [vmem:[%s2081_s28 + $0x130] sm:$0xff] %v925_v45  ;;  %1052 = vst [vmem:[%s2081_s28 + $0x138] sm:$0xff] %v926_v37  ;;  %v791_v50 = vmul.f32 %v1350_v49, %v2545_v55  ;;  %v792_v52 = vmul.f32 %v1350_v49, %v2546_v51  ;;  %1359 = vrsqrt.f32 %v649_v48  ;;  %v1437_v48 = vld [vmem:[%s1732_s8 + $0x1b0] sm:$0xff]  ;;  %v1438_v49 = vld [vmem:[%s1732_s8 + $0x1b8] sm:$0xff] }
 0x113   : > { %v927_v53 = vmul.f32 %v2067_v34, %v789_v47  ;;  %v928_v19 = vmul.f32 %v2069_v24, %v790_v18  ;;  %1361 = vrsqrt.f32 %v650_v43  ;;  %v520_v20 = vpop.xlane.xlu0 %519 }
 0x114   : > { %v1352_v0 = vpop.eup %1351  ;;  %v929_v58 = vmul.f32 %v2067_v34, %v791_v50  ;;  %v930_v56 = vmul.f32 %v2069_v24, %v792_v52  ;;  %v651_v59 = vmax.f32 %v520_v20, 1e-24  ;;  %v523_v62 = vpop.xlane.xlu1 %522 }
 0x115   : > { %v1354_v1 = vpop.eup %1353  ;;  %1053 = vst [vmem:[%s2081_s28 + $0x140] sm:$0xff] %v927_v53  ;;  %1054 = vst [vmem:[%s2081_s28 + $0x148] sm:$0xff] %v928_v19  ;;  %v793_v28 = vmul.f32 %v1352_v0, %v2547_v2  ;;  %v794_v61 = vmul.f32 %v1352_v0, %v2548_v60  ;;  %v652_v5 = vmax.f32 %v523_v62, 1e-24  ;;  %v1439_v19 = vld [vmem:[%s1732_s8 + $0x1c0] sm:$0xff]  ;;  %v1440_v0 = vld [vmem:[%s1732_s8 + $0x1c8] sm:$0xff] }
 0x116   : > { %1055 = vst [vmem:[%s2081_s28 + $0x150] sm:$0xff] %v929_v58  ;;  %1056 = vst [vmem:[%s2081_s28 + $0x158] sm:$0xff] %v930_v56  ;;  %v795_v57 = vmul.f32 %v1354_v1, %v2549_v29  ;;  %v796_v3 = vmul.f32 %v1354_v1, %v2550_v63  ;;  %1363 = vrsqrt.f32 %v651_v59  ;;  %v1441_v59 = vld [vmem:[%s1732_s8 + $0x1d0] sm:$0xff]  ;;  %v1442_v1 = vld [vmem:[%s1732_s8 + $0x1d8] sm:$0xff] }
 0x117   : > { %v931_v10 = vmul.f32 %v2067_v34, %v793_v28  ;;  %v932_v4 = vmul.f32 %v2069_v24, %v794_v61  ;;  %1365 = vrsqrt.f32 %v652_v5  ;;  %v526_v11 = vpop.xlane.xlu0 %525 }
 0x118   : > { %v1356_v30 = vpop.eup %1355  ;;  %v933_v31 = vmul.f32 %v2067_v34, %v795_v57  ;;  %v934_v35 = vmul.f32 %v2069_v24, %v796_v3  ;;  %v653_v7 = vmax.f32 %v526_v11, 1e-24  ;;  %v529_v15 = vpop.xlane.xlu1 %528 }
 0x119   : > { %v1358_v16 = vpop.eup %1357  ;;  %1057 = vst [vmem:[%s2081_s28 + $0x160] sm:$0xff] %v931_v10  ;;  %1058 = vst [vmem:[%s2081_s28 + $0x168] sm:$0xff] %v932_v4  ;;  %v797_v8 = vmul.f32 %v1356_v30, %v2551_v6  ;;  %v798_v38 = vmul.f32 %v1356_v30, %v2552_v25  ;;  %v654_v9 = vmax.f32 %v529_v15, 1e-24  ;;  %v1443_v4 = vld [vmem:[%s1732_s8 + $0x1e0] sm:$0xff]  ;;  %v1444_v30 = vld [vmem:[%s1732_s8 + $0x1e8] sm:$0xff] }
 0x11a   : > { %1059 = vst [vmem:[%s2081_s28 + $0x170] sm:$0xff] %v933_v31  ;;  %1060 = vst [vmem:[%s2081_s28 + $0x178] sm:$0xff] %v934_v35  ;;  %v799_v39 = vmul.f32 %v1433_v26, %v1358_v16  ;;  %v800_v17 = vmul.f32 %v1434_v27, %v1358_v16  ;;  %1367 = vrsqrt.f32 %v653_v7  ;;  %v1445_v7 = vld [vmem:[%s1732_s8 + $0x1f0] sm:$0xff]  ;;  %v1446_v16 = vld [vmem:[%s1732_s8 + $0x1f8] sm:$0xff] }
 0x11b   : > { %v935_v21 = vmul.f32 %v2067_v34, %v797_v8  ;;  %v936_v12 = vmul.f32 %v2069_v24, %v798_v38  ;;  %1369 = vrsqrt.f32 %v654_v9  ;;  %v532_v13 = vpop.xlane.xlu0 %531 }
 0x11c   : > { %v1360_v32 = vpop.eup %1359  ;;  %v937_v33 = vmul.f32 %v2067_v34, %v799_v39  ;;  %v938_v40 = vmul.f32 %v2069_v24, %v800_v17  ;;  %v655_v41 = vmax.f32 %v532_v13, 1e-24  ;;  %v535_v22 = vpop.xlane.xlu1 %534 }
 0x11d   : > { %v1362_v23 = vpop.eup %1361  ;;  %1061 = vst [vmem:[%s2081_s28 + $0x180] sm:$0xff] %v935_v21  ;;  %1062 = vst [vmem:[%s2081_s28 + $0x188] sm:$0xff] %v936_v12  ;;  %v801_v44 = vmul.f32 %v1435_v36, %v1360_v32  ;;  %v802_v45 = vmul.f32 %v1436_v54, %v1360_v32  ;;  %v656_v37 = vmax.f32 %v535_v22, 1e-24  ;;  %v1447_v12 = vld [vmem:[%s1732_s8 + $0x200] sm:$0xff]  ;;  %v1448_v32 = vld [vmem:[%s1732_s8 + $0x208] sm:$0xff] }
 0x11e   : > { %1063 = vst [vmem:[%s2081_s28 + $0x190] sm:$0xff] %v937_v33  ;;  %1064 = vst [vmem:[%s2081_s28 + $0x198] sm:$0xff] %v938_v40  ;;  %v803_v14 = vmul.f32 %v1437_v48, %v1362_v23  ;;  %v804_v46 = vmul.f32 %v1438_v49, %v1362_v23  ;;  %1371 = vrsqrt.f32 %v655_v41  ;;  %v1449_v41 = vld [vmem:[%s1732_s8 + $0x210] sm:$0xff]  ;;  %v1450_v23 = vld [vmem:[%s1732_s8 + $0x218] sm:$0xff] }
 0x11f   : > { %v939_v47 = vmul.f32 %v2067_v34, %v801_v44  ;;  %v940_v42 = vmul.f32 %v2069_v24, %v802_v45  ;;  %1373 = vrsqrt.f32 %v656_v37  ;;  %v538_v18 = vpop.xlane.xlu0 %537 }
 0x120   : > { %v1364_v43 = vpop.eup %1363  ;;  %v941_v55 = vmul.f32 %v2067_v34, %v803_v14  ;;  %v942_v50 = vmul.f32 %v2069_v24, %v804_v46  ;;  %v657_v51 = vmax.f32 %v538_v18, 1e-24  ;;  %v541_v52 = vpop.xlane.xlu1 %540 }
 0x121   : > { %v1366_v53 = vpop.eup %1365  ;;  %1065 = vst [vmem:[%s2081_s28 + $0x1a0] sm:$0xff] %v939_v47  ;;  %1066 = vst [vmem:[%s2081_s28 + $0x1a8] sm:$0xff] %v940_v42  ;;  %v805_v20 = vmul.f32 %v1439_v19, %v1364_v43  ;;  %v806_v58 = vmul.f32 %v1440_v0, %v1364_v43  ;;  %v658_v56 = vmax.f32 %v541_v52, 1e-24  ;;  %v1451_v42 = vld [vmem:[%s1732_s8 + $0x220] sm:$0xff]  ;;  %v1452_v43 = vld [vmem:[%s1732_s8 + $0x228] sm:$0xff] }
 0x122   : > { %1067 = vst [vmem:[%s2081_s28 + $0x1b0] sm:$0xff] %v941_v55  ;;  %1068 = vst [vmem:[%s2081_s28 + $0x1b8] sm:$0xff] %v942_v50  ;;  %v807_v62 = vmul.f32 %v1441_v59, %v1366_v53  ;;  %v808_v2 = vmul.f32 %v1442_v1, %v1366_v53  ;;  %1375 = vrsqrt.f32 %v657_v51  ;;  %v1453_v51 = vld [vmem:[%s1732_s8 + $0x230] sm:$0xff]  ;;  %v1454_v53 = vld [vmem:[%s1732_s8 + $0x238] sm:$0xff] }
 0x123   : > { %v943_v28 = vmul.f32 %v2067_v34, %v805_v20  ;;  %v944_v60 = vmul.f32 %v2069_v24, %v806_v58  ;;  %1377 = vrsqrt.f32 %v658_v56  ;;  %v544_v61 = vpop.xlane.xlu0 %543 }
 0x124   : > { %v1368_v5 = vpop.eup %1367  ;;  %v945_v29 = vmul.f32 %v2067_v34, %v807_v62  ;;  %v946_v57 = vmul.f32 %v2069_v24, %v808_v2  ;;  %v659_v63 = vmax.f32 %v544_v61, 1e-24  ;;  %v547_v3 = vpop.xlane.xlu1 %546 }
 0x125   : > { %v1370_v10 = vpop.eup %1369  ;;  %1069 = vst [vmem:[%s2081_s28 + $0x1c0] sm:$0xff] %v943_v28  ;;  %1070 = vst [vmem:[%s2081_s28 + $0x1c8] sm:$0xff] %v944_v60  ;;  %v809_v11 = vmul.f32 %v1443_v4, %v1368_v5  ;;  %v810_v31 = vmul.f32 %v1444_v30, %v1368_v5  ;;  %v660_v35 = vmax.f32 %v547_v3, 1e-24  ;;  %v1455_v60 = vld [vmem:[%s1732_s8 + $0x240] sm:$0xff]  ;;  %v1456_v5 = vld [vmem:[%s1732_s8 + $0x248] sm:$0xff] }
 0x126   : > { %1071 = vst [vmem:[%s2081_s28 + $0x1d0] sm:$0xff] %v945_v29  ;;  %1072 = vst [vmem:[%s2081_s28 + $0x1d8] sm:$0xff] %v946_v57  ;;  %v811_v15 = vmul.f32 %v1445_v7, %v1370_v10  ;;  %v812_v6 = vmul.f32 %v1446_v16, %v1370_v10  ;;  %1379 = vrsqrt.f32 %v659_v63  ;;  %v1457_v63 = vld [vmem:[%s1732_s8 + $0x250] sm:$0xff]  ;;  %v1458_v10 = vld [vmem:[%s1732_s8 + $0x258] sm:$0xff] }
 0x127   : > { %v947_v8 = vmul.f32 %v2067_v34, %v809_v11  ;;  %v948_v25 = vmul.f32 %v2069_v24, %v810_v31  ;;  %1381 = vrsqrt.f32 %v660_v35  ;;  %v550_v38 = vpop.xlane.xlu0 %549 }
 0x128   : > { %v1372_v9 = vpop.eup %1371  ;;  %v949_v26 = vmul.f32 %v2067_v34, %v811_v15  ;;  %v950_v39 = vmul.f32 %v2069_v24, %v812_v6  ;;  %v661_v27 = vmax.f32 %v550_v38, 1e-24  ;;  %v553_v17 = vpop.xlane.xlu1 %552 }
 0x129   : > { %v1374_v21 = vpop.eup %1373  ;;  %1073 = vst [vmem:[%s2081_s28 + $0x1e0] sm:$0xff] %v947_v8  ;;  %1074 = vst [vmem:[%s2081_s28 + $0x1e8] sm:$0xff] %v948_v25  ;;  %v813_v13 = vmul.f32 %v1447_v12, %v1372_v9  ;;  %v814_v33 = vmul.f32 %v1448_v32, %v1372_v9  ;;  %v662_v40 = vmax.f32 %v553_v17, 1e-24  ;;  %v1459_v25 = vld [vmem:[%s1732_s8 + $0x260] sm:$0xff]  ;;  %v1460_v9 = vld [vmem:[%s1732_s8 + $0x268] sm:$0xff] }
 0x12a   : > { %1075 = vst [vmem:[%s2081_s28 + $0x1f0] sm:$0xff] %v949_v26  ;;  %1076 = vst [vmem:[%s2081_s28 + $0x1f8] sm:$0xff] %v950_v39  ;;  %v815_v22 = vmul.f32 %v1449_v41, %v1374_v21  ;;  %v816_v36 = vmul.f32 %v1450_v23, %v1374_v21  ;;  %1383 = vrsqrt.f32 %v661_v27  ;;  %v1461_v27 = vld [vmem:[%s1732_s8 + $0x270] sm:$0xff]  ;;  %v1462_v21 = vld [vmem:[%s1732_s8 + $0x278] sm:$0xff] }
 0x12b   : > { %v951_v44 = vmul.f32 %v2067_v34, %v813_v13  ;;  %v952_v54 = vmul.f32 %v2069_v24, %v814_v33  ;;  %1385 = vrsqrt.f32 %v662_v40  ;;  %v556_v45 = vpop.xlane.xlu0 %555 }
 0x12c   : > { %v1376_v37 = vpop.eup %1375  ;;  %v953_v48 = vmul.f32 %v2067_v34, %v815_v22  ;;  %v954_v14 = vmul.f32 %v2069_v24, %v816_v36  ;;  %v663_v49 = vmax.f32 %v556_v45, 1e-24  ;;  %v559_v46 = vpop.xlane.xlu1 %558 }
 0x12d   : > { %v1378_v47 = vpop.eup %1377  ;;  %1077 = vst [vmem:[%s2081_s28 + $0x200] sm:$0xff] %v951_v44  ;;  %1078 = vst [vmem:[%s2081_s28 + $0x208] sm:$0xff] %v952_v54  ;;  %v817_v18 = vmul.f32 %v1451_v42, %v1376_v37  ;;  %v818_v55 = vmul.f32 %v1452_v43, %v1376_v37  ;;  %v664_v50 = vmax.f32 %v559_v46, 1e-24  ;;  %v1463_v54 = vld [vmem:[%s1732_s8 + $0x280] sm:$0xff]  ;;  %v1464_v37 = vld [vmem:[%s1732_s8 + $0x288] sm:$0xff] }
 0x12e   : > { %1079 = vst [vmem:[%s2081_s28 + $0x210] sm:$0xff] %v953_v48  ;;  %1080 = vst [vmem:[%s2081_s28 + $0x218] sm:$0xff] %v954_v14  ;;  %v819_v52 = vmul.f32 %v1453_v51, %v1378_v47  ;;  %v820_v19 = vmul.f32 %v1454_v53, %v1378_v47  ;;  %1387 = vrsqrt.f32 %v663_v49  ;;  %v1465_v49 = vld [vmem:[%s1732_s8 + $0x290] sm:$0xff]  ;;  %v1466_v47 = vld [vmem:[%s1732_s8 + $0x298] sm:$0xff] }
 0x12f   : > { %v955_v20 = vmul.f32 %v2067_v34, %v817_v18  ;;  %v956_v0 = vmul.f32 %v2069_v24, %v818_v55  ;;  %1389 = vrsqrt.f32 %v664_v50  ;;  %v562_v58 = vpop.xlane.xlu0 %561 }
 0x130   : > { %v1380_v56 = vpop.eup %1379  ;;  %v957_v59 = vmul.f32 %v2067_v34, %v819_v52  ;;  %v958_v62 = vmul.f32 %v2069_v24, %v820_v19  ;;  %v665_v1 = vmax.f32 %v562_v58, 1e-24  ;;  %v565_v2 = vpop.xlane.xlu1 %564 }
 0x131   : > { %v1382_v28 = vpop.eup %1381  ;;  %1081 = vst [vmem:[%s2081_s28 + $0x220] sm:$0xff] %v955_v20  ;;  %1082 = vst [vmem:[%s2081_s28 + $0x228] sm:$0xff] %v956_v0  ;;  %v821_v61 = vmul.f32 %v1455_v60, %v1380_v56  ;;  %v822_v29 = vmul.f32 %v1456_v5, %v1380_v56  ;;  %v666_v57 = vmax.f32 %v565_v2, 1e-24  ;;  %v1467_v0 = vld [vmem:[%s1732_s8 + $0x2a0] sm:$0xff]  ;;  %v1468_v56 = vld [vmem:[%s1732_s8 + $0x2a8] sm:$0xff] }
 0x132   : > { %1083 = vst [vmem:[%s2081_s28 + $0x230] sm:$0xff] %v957_v59  ;;  %1084 = vst [vmem:[%s2081_s28 + $0x238] sm:$0xff] %v958_v62  ;;  %v823_v3 = vmul.f32 %v1457_v63, %v1382_v28  ;;  %v824_v4 = vmul.f32 %v1458_v10, %v1382_v28  ;;  %1391 = vrsqrt.f32 %v665_v1  ;;  %v1469_v1 = vld [vmem:[%s1732_s8 + $0x2b0] sm:$0xff]  ;;  %v1470_v28 = vld [vmem:[%s1732_s8 + $0x2b8] sm:$0xff] }
 0x133   : > { %v959_v11 = vmul.f32 %v2067_v34, %v821_v61  ;;  %v960_v30 = vmul.f32 %v2069_v24, %v822_v29  ;;  %1393 = vrsqrt.f32 %v666_v57  ;;  %v568_v31 = vpop.xlane.xlu0 %567 }
 0x134   : > { %v1384_v35 = vpop.eup %1383  ;;  %v961_v7 = vmul.f32 %v2067_v34, %v823_v3  ;;  %v962_v15 = vmul.f32 %v2069_v24, %v824_v4  ;;  %v667_v16 = vmax.f32 %v568_v31, 1e-24  ;;  %v571_v6 = vpop.xlane.xlu1 %570 }
 0x135   : > { %v1386_v8 = vpop.eup %1385  ;;  %1085 = vst [vmem:[%s2081_s28 + $0x240] sm:$0xff] %v959_v11  ;;  %1086 = vst [vmem:[%s2081_s28 + $0x248] sm:$0xff] %v960_v30  ;;  %v825_v38 = vmul.f32 %v1459_v25, %v1384_v35  ;;  %v826_v26 = vmul.f32 %v1460_v9, %v1384_v35  ;;  %v668_v39 = vmax.f32 %v571_v6, 1e-24  ;;  %v1471_v30 = vld [vmem:[%s1732_s8 + $0x2c0] sm:$0xff]  ;;  %v1472_v35 = vld [vmem:[%s1732_s8 + $0x2c8] sm:$0xff] }
 0x136   : > { %1087 = vst [vmem:[%s2081_s28 + $0x250] sm:$0xff] %v961_v7  ;;  %1088 = vst [vmem:[%s2081_s28 + $0x258] sm:$0xff] %v962_v15  ;;  %v827_v17 = vmul.f32 %v1461_v27, %v1386_v8  ;;  %v828_v12 = vmul.f32 %v1462_v21, %v1386_v8  ;;  %1395 = vrsqrt.f32 %v667_v16  ;;  %v1473_v16 = vld [vmem:[%s1732_s8 + $0x2d0] sm:$0xff]  ;;  %v1474_v8 = vld [vmem:[%s1732_s8 + $0x2d8] sm:$0xff] }
 0x137   : > { %v963_v13 = vmul.f32 %v2067_v34, %v825_v38  ;;  %v964_v32 = vmul.f32 %v2069_v24, %v826_v26  ;;  %1397 = vrsqrt.f32 %v668_v39  ;;  %v574_v33 = vpop.xlane.xlu0 %573 }
 0x138   : > { %v1388_v40 = vpop.eup %1387  ;;  %v965_v41 = vmul.f32 %v2067_v34, %v827_v17  ;;  %v966_v22 = vmul.f32 %v2069_v24, %v828_v12  ;;  %v669_v23 = vmax.f32 %v574_v33, 1e-24  ;;  %v577_v36 = vpop.xlane.xlu1 %576 }
 0x139   : > { %v1390_v44 = vpop.eup %1389  ;;  %1089 = vst [vmem:[%s2081_s28 + $0x260] sm:$0xff] %v963_v13  ;;  %1090 = vst [vmem:[%s2081_s28 + $0x268] sm:$0xff] %v964_v32  ;;  %v829_v45 = vmul.f32 %v1463_v54, %v1388_v40  ;;  %v830_v48 = vmul.f32 %v1464_v37, %v1388_v40  ;;  %v670_v14 = vmax.f32 %v577_v36, 1e-24  ;;  %v1475_v32 = vld [vmem:[%s1732_s8 + $0x2e0] sm:$0xff]  ;;  %v1476_v40 = vld [vmem:[%s1732_s8 + $0x2e8] sm:$0xff] }
 0x13a   : > { %1091 = vst [vmem:[%s2081_s28 + $0x270] sm:$0xff] %v965_v41  ;;  %1092 = vst [vmem:[%s2081_s28 + $0x278] sm:$0xff] %v966_v22  ;;  %v831_v46 = vmul.f32 %v1465_v49, %v1390_v44  ;;  %v832_v42 = vmul.f32 %v1466_v47, %v1390_v44  ;;  %1399 = vrsqrt.f32 %v669_v23  ;;  %v1477_v23 = vld [vmem:[%s1732_s8 + $0x2f0] sm:$0xff]  ;;  %v1478_v44 = vld [vmem:[%s1732_s8 + $0x2f8] sm:$0xff] }
 0x13b   : > { %v967_v18 = vmul.f32 %v2067_v34, %v829_v45  ;;  %v968_v43 = vmul.f32 %v2069_v24, %v830_v48  ;;  %1401 = vrsqrt.f32 %v670_v14  ;;  %v580_v55 = vpop.xlane.xlu0 %579 }
 0x13c   : > { %v1392_v50 = vpop.eup %1391  ;;  %v969_v51 = vmul.f32 %v2067_v34, %v831_v46  ;;  %v970_v52 = vmul.f32 %v2069_v24, %v832_v42  ;;  %v671_v53 = vmax.f32 %v580_v55, 1e-24  ;;  %v583_v19 = vpop.xlane.xlu1 %582 }
 0x13d   : > { %v1394_v20 = vpop.eup %1393  ;;  %1093 = vst [vmem:[%s2081_s28 + $0x280] sm:$0xff] %v967_v18  ;;  %1094 = vst [vmem:[%s2081_s28 + $0x288] sm:$0xff] %v968_v43  ;;  %v833_v58 = vmul.f32 %v1467_v0, %v1392_v50  ;;  %v834_v59 = vmul.f32 %v1468_v56, %v1392_v50  ;;  %v672_v62 = vmax.f32 %v583_v19, 1e-24  ;;  %v1479_v43 = vld [vmem:[%s1732_s8 + $0x300] sm:$0xff]  ;;  %v1480_v50 = vld [vmem:[%s1732_s8 + $0x308] sm:$0xff] }
 0x13e   : > { %1095 = vst [vmem:[%s2081_s28 + $0x290] sm:$0xff] %v969_v51  ;;  %1096 = vst [vmem:[%s2081_s28 + $0x298] sm:$0xff] %v970_v52  ;;  %v835_v2 = vmul.f32 %v1469_v1, %v1394_v20  ;;  %v836_v60 = vmul.f32 %v1470_v28, %v1394_v20  ;;  %1403 = vrsqrt.f32 %v671_v53  ;;  %v1481_v53 = vld [vmem:[%s1732_s8 + $0x310] sm:$0xff]  ;;  %v1482_v20 = vld [vmem:[%s1732_s8 + $0x318] sm:$0xff] }
 0x13f   : > { %v971_v61 = vmul.f32 %v2067_v34, %v833_v58  ;;  %v972_v5 = vmul.f32 %v2069_v24, %v834_v59  ;;  %1405 = vrsqrt.f32 %v672_v62  ;;  %v586_v29 = vpop.xlane.xlu0 %585 }
 0x140   : > { %v1396_v57 = vpop.eup %1395  ;;  %v973_v63 = vmul.f32 %v2067_v34, %v835_v2  ;;  %v974_v3 = vmul.f32 %v2069_v24, %v836_v60  ;;  %v673_v10 = vmax.f32 %v586_v29, 1e-24  ;;  %v589_v4 = vpop.xlane.xlu1 %588 }
 0x141   : > { %v1398_v11 = vpop.eup %1397  ;;  %1097 = vst [vmem:[%s2081_s28 + $0x2a0] sm:$0xff] %v971_v61  ;;  %1098 = vst [vmem:[%s2081_s28 + $0x2a8] sm:$0xff] %v972_v5  ;;  %v837_v31 = vmul.f32 %v1471_v30, %v1396_v57  ;;  %v838_v7 = vmul.f32 %v1472_v35, %v1396_v57  ;;  %v674_v15 = vmax.f32 %v589_v4, 1e-24  ;;  %v1483_v5 = vld [vmem:[%s1732_s8 + $0x320] sm:$0xff]  ;;  %v1484_v57 = vld [vmem:[%s1732_s8 + $0x328] sm:$0xff] }
 0x142   : > { %1099 = vst [vmem:[%s2081_s28 + $0x2b0] sm:$0xff] %v973_v63  ;;  %1100 = vst [vmem:[%s2081_s28 + $0x2b8] sm:$0xff] %v974_v3  ;;  %v839_v6 = vmul.f32 %v1473_v16, %v1398_v11  ;;  %v840_v25 = vmul.f32 %v1474_v8, %v1398_v11  ;;  %1407 = vrsqrt.f32 %v673_v10  ;;  %v1485_v10 = vld [vmem:[%s1732_s8 + $0x330] sm:$0xff]  ;;  %v1486_v11 = vld [vmem:[%s1732_s8 + $0x338] sm:$0xff] }
 0x143   : > { %v975_v38 = vmul.f32 %v2067_v34, %v837_v31  ;;  %v976_v9 = vmul.f32 %v2069_v24, %v838_v7  ;;  %1409 = vrsqrt.f32 %v674_v15  ;;  %v592_v26 = vpop.xlane.xlu0 %591 }
 0x144   : > { %v1400_v39 = vpop.eup %1399  ;;  %v977_v27 = vmul.f32 %v2067_v34, %v839_v6  ;;  %v978_v17 = vmul.f32 %v2069_v24, %v840_v25  ;;  %v675_v21 = vmax.f32 %v592_v26, 1e-24  ;;  %v595_v12 = vpop.xlane.xlu1 %594 }
 0x145   : > { %v1402_v13 = vpop.eup %1401  ;;  %1101 = vst [vmem:[%s2081_s28 + $0x2c0] sm:$0xff] %v975_v38  ;;  %1102 = vst [vmem:[%s2081_s28 + $0x2c8] sm:$0xff] %v976_v9  ;;  %v841_v33 = vmul.f32 %v1475_v32, %v1400_v39  ;;  %v842_v41 = vmul.f32 %v1476_v40, %v1400_v39  ;;  %v676_v22 = vmax.f32 %v595_v12, 1e-24  ;;  %v1487_v9 = vld [vmem:[%s1732_s8 + $0x340] sm:$0xff]  ;;  %v1488_v39 = vld [vmem:[%s1732_s8 + $0x348] sm:$0xff] }
 0x146   : > { %1103 = vst [vmem:[%s2081_s28 + $0x2d0] sm:$0xff] %v977_v27  ;;  %1104 = vst [vmem:[%s2081_s28 + $0x2d8] sm:$0xff] %v978_v17  ;;  %v843_v36 = vmul.f32 %v1477_v23, %v1402_v13  ;;  %v844_v54 = vmul.f32 %v1478_v44, %v1402_v13  ;;  %1411 = vrsqrt.f32 %v675_v21  ;;  %v1489_v21 = vld [vmem:[%s1732_s8 + $0x350] sm:$0xff]  ;;  %v1490_v13 = vld [vmem:[%s1732_s8 + $0x358] sm:$0xff] }
 0x147   : > { %v979_v45 = vmul.f32 %v2067_v34, %v841_v33  ;;  %v980_v37 = vmul.f32 %v2069_v24, %v842_v41  ;;  %1413 = vrsqrt.f32 %v676_v22  ;;  %v598_v48 = vpop.xlane.xlu0 %597 }
 0x148   : > { %v1404_v14 = vpop.eup %1403  ;;  %v981_v49 = vmul.f32 %v2067_v34, %v843_v36  ;;  %v982_v46 = vmul.f32 %v2069_v24, %v844_v54  ;;  %v677_v47 = vmax.f32 %v598_v48, 1e-24  ;;  %v601_v42 = vpop.xlane.xlu1 %600 }
 0x149   : > { %v1406_v18 = vpop.eup %1405  ;;  %1105 = vst [vmem:[%s2081_s28 + $0x2e0] sm:$0xff] %v979_v45  ;;  %1106 = vst [vmem:[%s2081_s28 + $0x2e8] sm:$0xff] %v980_v37  ;;  %v845_v55 = vmul.f32 %v1479_v43, %v1404_v14  ;;  %v846_v51 = vmul.f32 %v1480_v50, %v1404_v14  ;;  %v678_v52 = vmax.f32 %v601_v42, 1e-24  ;;  %v1491_v37 = vld [vmem:[%s1732_s8 + $0x360] sm:$0xff]  ;;  %v1492_v14 = vld [vmem:[%s1732_s8 + $0x368] sm:$0xff] }
 0x14a   : > { %1107 = vst [vmem:[%s2081_s28 + $0x2f0] sm:$0xff] %v981_v49  ;;  %1108 = vst [vmem:[%s2081_s28 + $0x2f8] sm:$0xff] %v982_v46  ;;  %v847_v19 = vmul.f32 %v1481_v53, %v1406_v18  ;;  %v848_v0 = vmul.f32 %v1482_v20, %v1406_v18  ;;  %1415 = vrsqrt.f32 %v677_v47  ;;  %v1493_v47 = vld [vmem:[%s1732_s8 + $0x370] sm:$0xff]  ;;  %v1494_v18 = vld [vmem:[%s1732_s8 + $0x378] sm:$0xff] }
 0x14b   : > { %v983_v58 = vmul.f32 %v2067_v34, %v845_v55  ;;  %v984_v56 = vmul.f32 %v2069_v24, %v846_v51  ;;  %1417 = vrsqrt.f32 %v678_v52  ;;  %v604_v59 = vpop.xlane.xlu0 %603 }
 0x14c   : > { %v1408_v62 = vpop.eup %1407  ;;  %v985_v1 = vmul.f32 %v2067_v34, %v847_v19  ;;  %v986_v2 = vmul.f32 %v2069_v24, %v848_v0  ;;  %v679_v28 = vmax.f32 %v604_v59, 1e-24  ;;  %v607_v60 = vpop.xlane.xlu1 %606  ;;  %v1496_v59 = vld [vmem:[%s1732_s8 + $0x388] sm:$0xff] }
 0x14d   : > { %v1410_v61 = vpop.eup %1409  ;;  %1109 = vst [vmem:[%s2081_s28 + $0x300] sm:$0xff] %v983_v58  ;;  %1110 = vst [vmem:[%s2081_s28 + $0x308] sm:$0xff] %v984_v56  ;;  %v849_v29 = vmul.f32 %v1483_v5, %v1408_v62  ;;  %v850_v63 = vmul.f32 %v1484_v57, %v1408_v62  ;;  %v680_v3 = vmax.f32 %v607_v60, 1e-24  ;;  %v1495_v58 = vld [vmem:[%s1732_s8 + $0x380] sm:$0xff] }
 0x14e   : > { %1111 = vst [vmem:[%s2081_s28 + $0x310] sm:$0xff] %v985_v1  ;;  %1112 = vst [vmem:[%s2081_s28 + $0x318] sm:$0xff] %v986_v2  ;;  %v851_v4 = vmul.f32 %v1485_v10, %v1410_v61  ;;  %v852_v30 = vmul.f32 %v1486_v11, %v1410_v61  ;;  %1419 = vrsqrt.f32 %v679_v28  ;;  %v1497_v1 = vld [vmem:[%s1732_s8 + $0x390] sm:$0xff]  ;;  %v1498_v28 = vld [vmem:[%s1732_s8 + $0x398] sm:$0xff] }
 0x14f   : > { %v987_v31 = vmul.f32 %v2067_v34, %v849_v29  ;;  %v988_v35 = vmul.f32 %v2069_v24, %v850_v63  ;;  %1421 = vrsqrt.f32 %v680_v3  ;;  %v610_v7 = vpop.xlane.xlu0 %609  ;;  %v1499_v10 = vld [vmem:[%s1732_s8 + $0x3a0] sm:$0xff]  ;;  %v1500_v11 = vld [vmem:[%s1732_s8 + $0x3a8] sm:$0xff] }
 0x150   : > { %v1412_v15 = vpop.eup %1411  ;;  %v989_v16 = vmul.f32 %v2067_v34, %v851_v4  ;;  %v990_v6 = vmul.f32 %v2069_v24, %v852_v30  ;;  %v681_v8 = vmax.f32 %v610_v7, 1e-24  ;;  %v613_v25 = vpop.xlane.xlu1 %612  ;;  %v1502_v7 = vld [vmem:[%s1732_s8 + $0x3b8] sm:$0xff] }
 0x151   : > { %v1414_v38 = vpop.eup %1413  ;;  %1113 = vst [vmem:[%s2081_s28 + $0x320] sm:$0xff] %v987_v31  ;;  %1114 = vst [vmem:[%s2081_s28 + $0x328] sm:$0xff] %v988_v35  ;;  %v853_v26 = vmul.f32 %v1487_v9, %v1412_v15  ;;  %v854_v27 = vmul.f32 %v1488_v39, %v1412_v15  ;;  %v682_v17 = vmax.f32 %v613_v25, 1e-24  ;;  %v1501_v31 = vld [vmem:[%s1732_s8 + $0x3b0] sm:$0xff] }
 0x152   : > { %1115 = vst [vmem:[%s2081_s28 + $0x330] sm:$0xff] %v989_v16  ;;  %1116 = vst [vmem:[%s2081_s28 + $0x338] sm:$0xff] %v990_v6  ;;  %v855_v12 = vmul.f32 %v1489_v21, %v1414_v38  ;;  %v856_v32 = vmul.f32 %v1490_v13, %v1414_v38  ;;  %1423 = vrsqrt.f32 %v681_v8  ;;  %v1505_v21 = vld [vmem:[%s1732_s8 + $0x3d0] sm:$0xff]  ;;  %v1506_v13 = vld [vmem:[%s1732_s8 + $0x3d8] sm:$0xff] }
 0x153   : > { %v991_v33 = vmul.f32 %v2067_v34, %v853_v26  ;;  %v992_v40 = vmul.f32 %v2069_v24, %v854_v27  ;;  %1425 = vrsqrt.f32 %v682_v17  ;;  %v616_v41 = vpop.xlane.xlu0 %615  ;;  %v1503_v26 = vld [vmem:[%s1732_s8 + $0x3c0] sm:$0xff]  ;;  %v1504_v27 = vld [vmem:[%s1732_s8 + $0x3c8] sm:$0xff] }
 0x154   : > { %v1416_v22 = vpop.eup %1415  ;;  %v993_v23 = vmul.f32 %v2067_v34, %v855_v12  ;;  %v994_v36 = vmul.f32 %v2069_v24, %v856_v32  ;;  %v683_v44 = vmax.f32 %v616_v41, 1e-24  ;;  %v619_v54 = vpop.xlane.xlu1 %618 }
 0x155   : > { %v1418_v45 = vpop.eup %1417  ;;  %1117 = vst [vmem:[%s2081_s28 + $0x340] sm:$0xff] %v991_v33  ;;  %1118 = vst [vmem:[%s2081_s28 + $0x348] sm:$0xff] %v992_v40  ;;  %v857_v48 = vmul.f32 %v1491_v37, %v1416_v22  ;;  %v858_v49 = vmul.f32 %v1492_v14, %v1416_v22  ;;  %v684_v46 = vmax.f32 %v619_v54, 1e-24  ;;  %v1508_v54 = vld [vmem:[%s1732_s8 + $0x3e8] sm:$0xff] }
 0x156   : > { %1119 = vst [vmem:[%s2081_s28 + $0x350] sm:$0xff] %v993_v23  ;;  %1120 = vst [vmem:[%s2081_s28 + $0x358] sm:$0xff] %v994_v36  ;;  %v859_v42 = vmul.f32 %v1493_v47, %v1418_v45  ;;  %v860_v43 = vmul.f32 %v1494_v18, %v1418_v45  ;;  %1427 = vrsqrt.f32 %v683_v44  ;;  %v1507_v36 = vld [vmem:[%s1732_s8 + $0x3e0] sm:$0xff] }
 0x157   : > { %v995_v55 = vmul.f32 %v2067_v34, %v857_v48  ;;  %v996_v50 = vmul.f32 %v2069_v24, %v858_v49  ;;  %1429 = vrsqrt.f32 %v684_v46  ;;  %v622_v51 = vpop.xlane.xlu0 %621 }
 0x158   : > { %v1420_v52 = vpop.eup %1419  ;;  %v997_v53 = vmul.f32 %v2067_v34, %v859_v42  ;;  %v998_v19 = vmul.f32 %v2069_v24, %v860_v43  ;;  %v685_v20 = vmax.f32 %v622_v51, 1e-24 }
 0x159   : > { %v1422_v0 = vpop.eup %1421  ;;  %1121 = vst [vmem:[%s2081_s28 + $0x360] sm:$0xff] %v995_v55  ;;  %1122 = vst [vmem:[%s2081_s28 + $0x368] sm:$0xff] %v996_v50  ;;  %v861_v56 = vmul.f32 %v1495_v58, %v1420_v52  ;;  %v862_v62 = vmul.f32 %v1496_v59, %v1420_v52 }
 0x15a   : > { %1123 = vst [vmem:[%s2081_s28 + $0x370] sm:$0xff] %v997_v53  ;;  %1124 = vst [vmem:[%s2081_s28 + $0x378] sm:$0xff] %v998_v19  ;;  %v863_v2 = vmul.f32 %v1497_v1, %v1422_v0  ;;  %v864_v60 = vmul.f32 %v1498_v28, %v1422_v0  ;;  %1431 = vrsqrt.f32 %v685_v20 }
 0x15b   : > { %v999_v61 = vmul.f32 %v2067_v34, %v861_v56  ;;  %v1000_v5 = vmul.f32 %v2069_v24, %v862_v62 }
 0x15c   : > { %v1424_v29 = vpop.eup %1423  ;;  %v1001_v57 = vmul.f32 %v2067_v34, %v863_v2  ;;  %v1002_v63 = vmul.f32 %v2069_v24, %v864_v60 }
 0x15d   : > { %v1426_v3 = vpop.eup %1425  ;;  %1125 = vst [vmem:[%s2081_s28 + $0x380] sm:$0xff] %v999_v61  ;;  %1126 = vst [vmem:[%s2081_s28 + $0x388] sm:$0xff] %v1000_v5  ;;  %v865_v4 = vmul.f32 %v1499_v10, %v1424_v29  ;;  %v866_v30 = vmul.f32 %v1500_v11, %v1424_v29 }
 0x15e   : > { %1127 = vst [vmem:[%s2081_s28 + $0x390] sm:$0xff] %v1001_v57  ;;  %1128 = vst [vmem:[%s2081_s28 + $0x398] sm:$0xff] %v1002_v63  ;;  %v867_v35 = vmul.f32 %v1501_v31, %v1426_v3  ;;  %v868_v15 = vmul.f32 %v1502_v7, %v1426_v3 }
 0x15f   : > { %v1003_v16 = vmul.f32 %v2067_v34, %v865_v4  ;;  %v1004_v6 = vmul.f32 %v2069_v24, %v866_v30 }
 0x160   : > { %v1428_v8 = vpop.eup %1427  ;;  %v1005_v25 = vmul.f32 %v2067_v34, %v867_v35  ;;  %v1006_v38 = vmul.f32 %v2069_v24, %v868_v15 }
 0x161   : > { %v1430_v9 = vpop.eup %1429  ;;  %1129 = vst [vmem:[%s2081_s28 + $0x3a0] sm:$0xff] %v1003_v16  ;;  %1130 = vst [vmem:[%s2081_s28 + $0x3a8] sm:$0xff] %v1004_v6  ;;  %v869_v39 = vmul.f32 %v1503_v26, %v1428_v8  ;;  %v870_v17 = vmul.f32 %v1504_v27, %v1428_v8 }
 0x162   : > { %1131 = vst [vmem:[%s2081_s28 + $0x3b0] sm:$0xff] %v1005_v25  ;;  %1132 = vst [vmem:[%s2081_s28 + $0x3b8] sm:$0xff] %v1006_v38  ;;  %v871_v12 = vmul.f32 %v1505_v21, %v1430_v9  ;;  %v872_v32 = vmul.f32 %v1506_v13, %v1430_v9 }
 0x163   : > { %v1007_v33 = vmul.f32 %v2067_v34, %v869_v39  ;;  %v1008_v40 = vmul.f32 %v2069_v24, %v870_v17  ;;  %1146 = sbr.rel (!%p1670_p9) target bundleno = 390 (0x186), region = 36 }
 0x164   : > { %v1432_v41 = vpop.eup %1431  ;;  %v1009_v22 = vmul.f32 %v2067_v34, %v871_v12  ;;  %v1010_v23 = vmul.f32 %v2069_v24, %v872_v32 }
 0x165   : > { %1133 = vst [vmem:[%s2081_s28 + $0x3c0] sm:$0xff] %v1007_v33  ;;  %1134 = vst [vmem:[%s2081_s28 + $0x3c8] sm:$0xff] %v1008_v40  ;;  %v873_v44 = vmul.f32 %v1507_v36, %v1432_v41  ;;  %v874_v45 = vmul.f32 %v1508_v54, %v1432_v41 }
 0x166   : > { %1135 = vst [vmem:[%s2081_s28 + $0x3d0] sm:$0xff] %v1009_v22  ;;  %1136 = vst [vmem:[%s2081_s28 + $0x3d8] sm:$0xff] %v1010_v23 }
 0x167   : > { %v1011_v37 = vmul.f32 %v2067_v34, %v873_v44  ;;  %v1012_v48 = vmul.f32 %v2069_v24, %v874_v45 }
 0x169   : > { %1137 = vst [vmem:[%s2081_s28 + $0x3e0] sm:$0xff] %v1011_v37  ;;  %1138 = vst [vmem:[%s2081_s28 + $0x3e8] sm:$0xff] %v1012_v48 }
 0x16a   : > { %s2562_s14 = smov (!%p1149_p6, %s1148_s14), 63 }
 0x16b   : > { %s2457_s16 = sshll.u32 %s2562_s14, 8 }
 0x16c   : > { %s1154_s17 = ssub.s32 16128, %s2457_s16 }
 0x16d   : > { %1155 = vsyncadd %s1140_s3, %s1154_s17  ;;  %p1247_p10 = scmp.ne.s32.totalorder %s2457_s16, 0  ;;  %s1261_s20 = smul.u32 16128, %s1647_s13 }
 0x16e   : > { %s1161_s22 = sshll.u32 %s2081_s28, 4  ;;  %s1608_s29 = smov [#allocation5]   ;;  %s2470_s22 = int_to_ptr.vmem [resolvable:$true] %s1161_s22 }
 0x16f   : > { %s2468_s25 = scalar_lea.hbm %s2518_s2, %s1261_s20  ;;  %s1537_s27 = scalar_lea.vmem %s2470_s22, %s2457_s16 }
 0x170   : > { %p1538_p9 = scmp.ne.s32.totalorder %s2470_s22, %s1537_s27  ;;  %s1541_s30 = sshll.u32 %s1608_s29, 4  ;;  %s1542_s30 = int_to_ptr.vmem [resolvable:$false] %s1541_s30 }
 0x171   : > { %s1543_s13 = scalar_lea.vmem %s1542_s30, 32256  ;;  %p1544_p12 = scmp.lt.s32.totalorder %s2470_s22, %s1542_s30 }
 0x172   : > { %p1539_p11 = pnand %p1538_p9, %p1247_p10  ;;  %p1545_p0 = scmp.lt.s32.totalorder %s1543_s13, %s1537_s27 }
 0x174   : > { %p1540_p13 = pneg %p1539_p11  ;;  %p1546_p1 = por %p1545_p0, %p1544_p12 }
 0x176   : > { %p1547_p3 = pnand %p1546_p1, %p1540_p13 }
 0x178   : > { %1550 = shalt.err (!%p1547_p3)
}
 0x179   : > { %s1551_s5 = scalar_lea.hbm %s2468_s25, %s2457_s16  ;;  %s1555_s19 = scalar_lea.hbm %s2518_s2, 32000 }
 0x17a   : > { %p1552_p4 = scmp.ne.s32.totalorder %s2468_s25, %s1551_s5  ;;  %p1556_p7 = scmp.lt.u32.totalorder %s2468_s25, %s2518_s2 }
 0x17b   : > { %p1557_p8 = scmp.lt.u32.totalorder %s1555_s19, %s1551_s5  ;;  %p1559_p9 = scmp.lt.u32.totalorder %s1551_s5, %s2468_s25 }
 0x17c   : > { %p1553_p5 = pnand %p1552_p4, %p1247_p10 }
 0x17d   : > { %p1558_p6 = por %p1557_p8, %p1556_p7 }
 0x17e   : > { %p1554_p2 = pneg %p1553_p5 }
 0x17f   : > { %p1560_p11 = por %p1559_p9, %p1558_p6 }
 0x181   : > { %p1561_p13 = pnand %p1560_p11, %p1554_p2 }
 0x183   : > { %1564 = shalt.err (!%p1561_p13)
}
 0x184   : > { %s1609_s6 = smov 256   ;;  %s1610_s14 = smov 16  }
 0x185   : > { %1167 = dma.vmem_to_hbm [thread:$0]  (%p1247_p10), %s2470_s22, %s2457_s16, %s2468_s25, %s1140_s3, %s1609_s6, %s1609_s6, %s1610_s14  }
 0x186 PF: > { %s1176_s17 = sand.u32 1, %s1591_s9   ;;  %p2553_p12 = scmp.ne.s32.totalorder %s2532_s21, 0 }
 0x187   : > { %p2554_p0 = scmp.ge.s32.totalorder %s1603_s12, 2  ;;  %s1177_s20 = scalar_lea.sflag [#allocation4], %s1176_s17 }
 0x189   : > { %p1267_p1 = pnand %p2554_p0, %p2553_p12 }
 0x18b   : > { %1586 = dma.done.wait (!%p1267_p1), %s1177_s20, 16128  }
 0x18c   : > { %1588 = vsyncadd (!%p1267_p1), %s1177_s20, 4294951168  ;;  %p15_p3 = scmp.ge.s32.totalorder %s1651_s15, 4   ;;  %s2555_s9 = smov %s1595_s10 }
 0x18d   : > { %s2556_s10 = smov %s1599_s11  ;;  %s2557_s11 = smov %s1663_s18 }
 0x18e   : > { %s2558_s12 = smov %s1651_s15  ;;  %17 = sbr.rel (!%p15_p3) target bundleno = 5 (0x5), region = 73 }
 0x195   :  { %1182 = vsyncpa [#allocation3], 1 }
 0x196   :  { %1184 = vsyncpa [#allocation3 + $0x1], 1 }
 0x197   :  { %1185 = vsyncpa [#allocation4], 1 }
 0x198   :  { %1187 = vsyncpa [#allocation4 + $0x1], 1 }

</bundles_post_ra>
